<compile_context>
chip_gen: v6e
topology: v6e:2x2x1
jax: 0.10.0
libtpu: 0.0.40
codegen_flags: <defaults>
</compile_context>

<pallas_src>
import jax
import jax.numpy as jnp
from jax.experimental import pallas as pl
from jax.experimental.pallas import tpu as pltpu

LANE = 128
SUBLANE = 8


def _round_up(v, m):
    return ((v + m - 1) // m) * m


def neuralnet_kernel(x_ref, t_ref, beff_ref, wl1_ref, bl1_ref,
                     wl2_ref, bl2_ref, wl3_ref, bl3_ref, out_ref):
    # x_ref:  (TM, F_pad)        input tile, channel-major flatten, zero-padded lanes
    # t_ref:  (F_pad, Fc_pad)    fused conv1∘conv2 Toeplitz operator (zero-padded)
    # beff:   (1, Fc_pad)        fused conv bias (pad lanes = 0)
    # wl1:    (Fc_pad, H_pad)  wl2: (H_pad, H_pad)  wl3: (H_pad, NC_pad)
    h = jnp.dot(x_ref[...], t_ref[...],
                preferred_element_type=jnp.float32) + beff_ref[...]
    h = jnp.maximum(h, 0.0)                                            # relu2
    z1 = jnp.maximum(
        jnp.dot(h, wl1_ref[...], preferred_element_type=jnp.float32) + bl1_ref[...],
        0.0)                                                           # relu3
    z2 = jnp.maximum(
        jnp.dot(z1, wl2_ref[...], preferred_element_type=jnp.float32) + bl2_ref[...],
        0.0)                                                           # relu4
    out_ref[...] = (
        jnp.dot(z2, wl3_ref[...], preferred_element_type=jnp.float32) + bl3_ref[...])


def prepare_kernel_params(params, in_length):
    """One-time weight prep (hoisted out of the per-call path). All lane dims padded to 128."""
    w1, b1 = params['c1_w'], params['c1_b']      # (C_h, C_in, K), (C_h,)
    w2, b2 = params['c2_w'], params['c2_b']      # (C_h, C_h, K), (C_h,)
    W1, B1 = params['l1_w'], params['l1_b']      # (H, C_h*L2), (H,)
    W2, B2 = params['l2_w'], params['l2_b']      # (H, H), (H,)
    W3, B3 = params['l3_w'], params['l3_b']      # (NC, H), (NC,)
    C_h, C_in, K = w1.shape
    L = in_length
    Keff = 2 * K - 1
    L2 = L - Keff + 1                            # = (L-K+1) - K + 1
    H = W1.shape[0]
    NC = W3.shape[0]

    F_in = C_in * L
    F_conv = C_h * L2
    F_pad = _round_up(F_in, LANE)
    Fc_pad = _round_up(F_conv, LANE)
    H_pad = _round_up(H, LANE)
    NC_pad = _round_up(NC, LANE)

    # Effective K=2K-1 conv (no ReLU between c1 and c2 in the module's forward):
    #   W_eff[o,i,t] = Σ_{m, k1+k2=t} w2[o,m,k2] * w1[m,i,k1]
    w12 = jnp.einsum('omb,mia->oiab', w2, w1)                          # (o,i,k1,k2)
    W_eff = jnp.zeros((C_h, C_in, Keff), jnp.float32)
    for a in range(K):
        for b in range(K):
            W_eff = W_eff.at[:, :, a + b].add(w12[:, :, a, b])

    # Toeplitz: T[c_in*L + l, c_out*L2 + l2] = W_eff[c_out, c_in, l - l2]
    band = jnp.transpose(W_eff, (1, 2, 0))                             # (C_in, Keff, C_h)
    T4 = jnp.zeros((C_in, L, C_h, L2), jnp.float32)
    for l2 in range(L2):
        T4 = T4.at[:, l2:l2 + Keff, :, l2].set(band)
    T = T4.reshape(F_in, F_conv)
    T_pad = jnp.zeros((F_pad, Fc_pad), jnp.float32).at[:F_in, :F_conv].set(T)

    # Fused conv bias, tiled to channel-major flatten order (f = c*L2 + l2); pad lanes = 0.
    b_eff = b2 + jnp.einsum('omk,m->o', w2, b1)                        # (C_h,)
    b_eff_pad = jnp.zeros((1, Fc_pad), jnp.float32).at[0, :F_conv].set(jnp.repeat(b_eff, L2))

    # Linear layers, transposed for x @ W, zero-padded to 128-multiples.
    wl1 = jnp.zeros((Fc_pad, H_pad), jnp.float32).at[:F_conv, :H].set(W1.T)
    bl1 = jnp.zeros((1, H_pad), jnp.float32).at[0, :H].set(B1)
    wl2 = jnp.zeros((H_pad, H_pad), jnp.float32).at[:H, :H].set(W2.T)
    bl2 = jnp.zeros((1, H_pad), jnp.float32).at[0, :H].set(B2)
    wl3 = jnp.zeros((H_pad, NC_pad), jnp.float32).at[:H, :NC].set(W3.T)
    # Pad logits biased to a large negative so padded output can feed argmax/softmax directly.
    bl3 = jnp.full((1, NC_pad), -1e30, jnp.float32).at[0, :NC].set(B3)

    return {
        'T': T_pad, 'b_eff': b_eff_pad,
        'wl1': wl1, 'bl1': bl1, 'wl2': wl2, 'bl2': bl2, 'wl3': wl3, 'bl3': bl3,
        'f_in': F_in, 'f_pad': F_pad, 'fc_pad': Fc_pad, 'h_pad': H_pad,
        'num_classes': NC, 'nc_pad': NC_pad,
    }


def neuralnet_forward(x_ncl, kp, unpad=True):
    """x_ncl: (N, C_in, L) float32 (PyTorch Conv1d layout).

    Returns (N, num_classes) if unpad=True, else the padded (N_pad, 128) logits
    (pad lanes = -1e30) to avoid the per-call epilogue slice in serving paths.
    """
    N = x_ncl.shape[0]
    F_in, F_pad = kp['f_in'], kp['f_pad']
    Fc_pad, H_pad = kp['fc_pad'], kp['h_pad']
    NC, NC_pad = kp['num_classes'], kp['nc_pad']

    # Batch tiling: full sublane minimum; tile up to 256 rows/step (fits every
    # generation's VMEM with double-buffered x/out + resident weights).
    N_pad8 = max(_round_up(N, SUBLANE), SUBLANE)
    TM = min(256, N_pad8)
    N_pad = _round_up(N_pad8, TM)
    grid = (N_pad // TM,)

    x_flat = x_ncl.reshape(N, F_in)   # contiguous channel-major flatten (no transpose)
    x_pad = jnp.zeros((N_pad, F_pad), jnp.float32).at[:N, :F_in].set(x_flat)

    weights = (kp['T'], kp['b_eff'], kp['wl1'], kp['bl1'],
               kp['wl2'], kp['bl2'], kp['wl3'], kp['bl3'])

    # Weights DMA once (constant block index) and stay VMEM-resident across steps.
    weight_specs = [pl.BlockSpec(w.shape, lambda i: (0, 0)) for w in weights]

    flops = 2 * N_pad * (F_pad * Fc_pad + Fc_pad * H_pad + H_pad * H_pad + H_pad * NC_pad)
    weight_bytes = sum(int(w.size) * 4 for w in weights)
    bytes_accessed = weight_bytes + N_pad * (F_pad + NC_pad) * 4   # weights once, x/out once

    out_pad = pl.pallas_call(
        neuralnet_kernel,
        out_shape=jax.ShapeDtypeStruct((N_pad, NC_pad), jnp.float32),
        grid_spec=pltpu.PrefetchScalarGridSpec(
            num_scalar_prefetch=0,
            grid=grid,
            in_specs=[pl.BlockSpec((TM, F_pad), lambda i: (i, 0))] + weight_specs,
            out_specs=pl.BlockSpec((TM, NC_pad), lambda i: (i, 0)),
        ),
        compiler_params=pltpu.CompilerParams(dimension_semantics=("parallel",)),
        cost_estimate=pl.CostEstimate(flops=flops, transcendentals=0,
                                      bytes_accessed=bytes_accessed),
    )(x_pad, *weights)

    if unpad:
        return out_pad[:N, :NC]
    return out_pad


def ref_forward(x, params):
    """Pure-JAX reference with PyTorch semantics (independent, un-fused conv path)."""
    dn = ('NCH', 'OIH', 'NCH')
    h1 = jax.lax.conv_general_dilated(x, params['c1_w'], (1,), 'VALID',
                                      dimension_numbers=dn) + params['c1_b'][None, :, None]
    h2 = jax.lax.conv_general_dilated(h1, params['c2_w'], (1,), 'VALID',
                                      dimension_numbers=dn) + params['c2_b'][None, :, None]
    h2 = jnp.maximum(h2, 0.0)
    flat = h2.reshape(h2.shape[0], -1)
    z = jnp.maximum(flat @ params['l1_w'].T + params['l1_b'], 0.0)
    z = jnp.maximum(z @ params['l2_w'].T + params['l2_b'], 0.0)
    return z @ params['l3_w'].T + params['l3_b']


def init_params(key, in_channels, kernel_size, in_length, num_classes,
                hidden_channels, hidden_size):
    """Deterministic PyTorch-style uniform(-1/sqrt(fan_in), 1/sqrt(fan_in)) init."""
    ks = jax.random.split(key, 10)

    def u(k, shape, fan_in):
        bound = 1.0 / float(fan_in) ** 0.5
        return jax.random.uniform(k, shape, jnp.float32, -bound, bound)

    F = (in_length - kernel_size + 1 - kernel_size + 1) * hidden_channels
    return {
        'c1_w': u(ks[0], (hidden_channels, in_channels, kernel_size), in_channels * kernel_size),
        'c1_b': u(ks[1], (hidden_channels,), in_channels * kernel_size),
        'c2_w': u(ks[2], (hidden_channels, hidden_channels, kernel_size),
                  hidden_channels * kernel_size),
        'c2_b': u(ks[3], (hidden_channels,), hidden_channels * kernel_size),
        'l1_w': u(ks[4], (hidden_size, F), F),
        'l1_b': u(ks[5], (hidden_size,), F),
        'l2_w': u(ks[6], (hidden_size, hidden_size), hidden_size),
        'l2_b': u(ks[7], (hidden_size,), hidden_size),
        'l3_w': u(ks[8], (num_classes, hidden_size), hidden_size),
        'l3_b': u(ks[9], (num_classes,), hidden_size),
    }


if __name__ == "__main__":
    # Small shapes consistent with the module's forward.
    N, C_in, L_in, K = 2, 4, 16, 3
    C_h, H, NUM_CLASSES = 6, 400, 5          # hidden_size = 400 as in the module

    key = jax.random.PRNGKey(0)
    kp_key, kx = jax.random.split(key)
    params = init_params(kp_key, C_in, K, L_in, NUM_CLASSES, C_h, H)
    x = jax.random.normal(kx, (N, C_in, L_in), dtype=jnp.float32)    # NCL input

    kern_params = prepare_kernel_params(params, L_in)                # one-time prep
    out = neuralnet_forward(x, kern_params)
    out = jax.block_until_ready(out)

    ref = ref_forward(x, params)
    assert out.shape == (N, NUM_CLASSES), out.shape
    assert jnp.allclose(out, ref, rtol=2e-4, atol=2e-4), float(jnp.max(jnp.abs(out - ref)))
    print("KERNEL_OK")
</pallas_src>

<mosaic_0001>
module attributes {stable_mosaic.version = 11 : i64} {
  func.func @neuralnet_kernel(%arg0: i32, %arg1: memref<8x128xf32, #tpu.memory_space<vmem>>, %arg2: memref<128x128xf32, #tpu.memory_space<vmem>>, %arg3: memref<1x128xf32, #tpu.memory_space<vmem>>, %arg4: memref<128x512xf32, #tpu.memory_space<vmem>>, %arg5: memref<1x512xf32, #tpu.memory_space<vmem>>, %arg6: memref<512x512xf32, #tpu.memory_space<vmem>>, %arg7: memref<1x512xf32, #tpu.memory_space<vmem>>, %arg8: memref<512x128xf32, #tpu.memory_space<vmem>>, %arg9: memref<1x128xf32, #tpu.memory_space<vmem>>, %arg10: memref<8x128xf32, #tpu.memory_space<vmem>>) attributes {dimension_semantics = [#tpu.dimension_semantics<parallel>], iteration_bounds = array<i64: 1>, scalar_prefetch = 0 : i64, scratch_operands = 0 : i64, tpu.core_type = #tpu.core_type<tc>, window_params = [{transform_indices = @transform_0, window_bounds = array<i64: 8, 128>}, {pipeline_mode = #tpu.pipeline_mode<synchronous>, transform_indices = @transform_1, window_bounds = array<i64: 128, 128>}, {pipeline_mode = #tpu.pipeline_mode<synchronous>, transform_indices = @transform_2, window_bounds = array<i64: 1, 128>}, {pipeline_mode = #tpu.pipeline_mode<synchronous>, transform_indices = @transform_3, window_bounds = array<i64: 128, 512>}, {pipeline_mode = #tpu.pipeline_mode<synchronous>, transform_indices = @transform_4, window_bounds = array<i64: 1, 512>}, {pipeline_mode = #tpu.pipeline_mode<synchronous>, transform_indices = @transform_5, window_bounds = array<i64: 512, 512>}, {pipeline_mode = #tpu.pipeline_mode<synchronous>, transform_indices = @transform_6, window_bounds = array<i64: 1, 512>}, {pipeline_mode = #tpu.pipeline_mode<synchronous>, transform_indices = @transform_7, window_bounds = array<i64: 512, 128>}, {pipeline_mode = #tpu.pipeline_mode<synchronous>, transform_indices = @transform_8, window_bounds = array<i64: 1, 128>}, {transform_indices = @transform_9, window_bounds = array<i64: 8, 128>}]} {
    %c0 = arith.constant 0 : index
    %c0_0 = arith.constant 0 : index
    %0 = vector.load %arg1[%c0, %c0_0] : memref<8x128xf32, #tpu.memory_space<vmem>>, vector<8x128xf32>
    %c0_1 = arith.constant 0 : index
    %c0_2 = arith.constant 0 : index
    %1 = vector.load %arg2[%c0_1, %c0_2] : memref<128x128xf32, #tpu.memory_space<vmem>>, vector<128x128xf32>
    %cst = arith.constant dense<0.000000e+00> : vector<8x128xf32>
    %2 = tpu.matmul %0, %1, %cst {dimension_numbers = #tpu.dot_dimension_numbers<[1], [0], [0], [1], [0, 0, 1, 1], [], []>} : vector<8x128xf32>, vector<128x128xf32>, vector<8x128xf32> -> vector<8x128xf32>
    %c0_3 = arith.constant 0 : index
    %c0_4 = arith.constant 0 : index
    %3 = vector.load %arg3[%c0_3, %c0_4] : memref<1x128xf32, #tpu.memory_space<vmem>>, vector<1x128xf32>
    %4 = vector.broadcast %3 : vector<1x128xf32> to vector<8x128xf32>
    %5 = arith.addf %2, %4 : vector<8x128xf32>
    %cst_5 = arith.constant 0.000000e+00 : f32
    %6 = vector.broadcast %cst_5 : f32 to vector<8x128xf32>
    %7 = arith.maximumf %5, %6 : vector<8x128xf32>
    %c0_6 = arith.constant 0 : index
    %c0_7 = arith.constant 0 : index
    %8 = vector.load %arg4[%c0_6, %c0_7] : memref<128x512xf32, #tpu.memory_space<vmem>>, vector<128x512xf32>
    %cst_8 = arith.constant dense<0.000000e+00> : vector<8x512xf32>
    %9 = tpu.matmul %7, %8, %cst_8 {dimension_numbers = #tpu.dot_dimension_numbers<[1], [0], [0], [1], [0, 0, 1, 1], [], []>} : vector<8x128xf32>, vector<128x512xf32>, vector<8x512xf32> -> vector<8x512xf32>
    %c0_9 = arith.constant 0 : index
    %c0_10 = arith.constant 0 : index
    %10 = vector.load %arg5[%c0_9, %c0_10] : memref<1x512xf32, #tpu.memory_space<vmem>>, vector<1x512xf32>
    %11 = vector.broadcast %10 : vector<1x512xf32> to vector<8x512xf32>
    %12 = arith.addf %9, %11 : vector<8x512xf32>
    %cst_11 = arith.constant 0.000000e+00 : f32
    %13 = vector.broadcast %cst_11 : f32 to vector<8x512xf32>
    %14 = arith.maximumf %12, %13 : vector<8x512xf32>
    %c0_12 = arith.constant 0 : index
    %c0_13 = arith.constant 0 : index
    %15 = vector.load %arg6[%c0_12, %c0_13] : memref<512x512xf32, #tpu.memory_space<vmem>>, vector<512x512xf32>
    %cst_14 = arith.constant dense<0.000000e+00> : vector<8x512xf32>
    %16 = tpu.matmul %14, %15, %cst_14 {dimension_numbers = #tpu.dot_dimension_numbers<[1], [0], [0], [1], [0, 0, 1, 1], [], []>} : vector<8x512xf32>, vector<512x512xf32>, vector<8x512xf32> -> vector<8x512xf32>
    %c0_15 = arith.constant 0 : index
    %c0_16 = arith.constant 0 : index
    %17 = vector.load %arg7[%c0_15, %c0_16] : memref<1x512xf32, #tpu.memory_space<vmem>>, vector<1x512xf32>
    %18 = vector.broadcast %17 : vector<1x512xf32> to vector<8x512xf32>
    %19 = arith.addf %16, %18 : vector<8x512xf32>
    %cst_17 = arith.constant 0.000000e+00 : f32
    %20 = vector.broadcast %cst_17 : f32 to vector<8x512xf32>
    %21 = arith.maximumf %19, %20 : vector<8x512xf32>
    %c0_18 = arith.constant 0 : index
    %c0_19 = arith.constant 0 : index
    %22 = vector.load %arg8[%c0_18, %c0_19] : memref<512x128xf32, #tpu.memory_space<vmem>>, vector<512x128xf32>
    %cst_20 = arith.constant dense<0.000000e+00> : vector<8x128xf32>
    %23 = tpu.matmul %21, %22, %cst_20 {dimension_numbers = #tpu.dot_dimension_numbers<[1], [0], [0], [1], [0, 0, 1, 1], [], []>} : vector<8x512xf32>, vector<512x128xf32>, vector<8x128xf32> -> vector<8x128xf32>
    %c0_21 = arith.constant 0 : index
    %c0_22 = arith.constant 0 : index
    %24 = vector.load %arg9[%c0_21, %c0_22] : memref<1x128xf32, #tpu.memory_space<vmem>>, vector<1x128xf32>
    %25 = vector.broadcast %24 : vector<1x128xf32> to vector<8x128xf32>
    %26 = arith.addf %23, %25 : vector<8x128xf32>
    %c0_23 = arith.constant 0 : index
    %c0_24 = arith.constant 0 : index
    %27 = vector.load %arg10[%c0_23, %c0_24] : memref<8x128xf32, #tpu.memory_space<vmem>>, vector<8x128xf32>
    tpu.vector_store %arg10[%c0_23, %c0_24], %26 {strides = array<i32>} : memref<8x128xf32, #tpu.memory_space<vmem>>, vector<8x128xf32>,
    return
  }
  func.func @transform_0(%arg0: i32) -> (i32, i32) {
    %c0_i32 = arith.constant 0 : i32
    %c0_i32_0 = arith.constant 0 : i32
    return %arg0, %c0_i32 : i32, i32
  }
  func.func @transform_1(%arg0: i32) -> (i32, i32) {
    %c0_i32 = arith.constant 0 : i32
    %c0_i32_0 = arith.constant 0 : i32
    %c0_i32_1 = arith.constant 0 : i32
    return %c0_i32, %c0_i32_0 : i32, i32
  }
  func.func @transform_2(%arg0: i32) -> (i32, i32) {
    %c0_i32 = arith.constant 0 : i32
    %c0_i32_0 = arith.constant 0 : i32
    %c0_i32_1 = arith.constant 0 : i32
    return %c0_i32, %c0_i32_0 : i32, i32
  }
  func.func @transform_3(%arg0: i32) -> (i32, i32) {
    %c0_i32 = arith.constant 0 : i32
    %c0_i32_0 = arith.constant 0 : i32
    %c0_i32_1 = arith.constant 0 : i32
    return %c0_i32, %c0_i32_0 : i32, i32
  }
  func.func @transform_4(%arg0: i32) -> (i32, i32) {
    %c0_i32 = arith.constant 0 : i32
    %c0_i32_0 = arith.constant 0 : i32
    %c0_i32_1 = arith.constant 0 : i32
    return %c0_i32, %c0_i32_0 : i32, i32
  }
  func.func @transform_5(%arg0: i32) -> (i32, i32) {
    %c0_i32 = arith.constant 0 : i32
    %c0_i32_0 = arith.constant 0 : i32
    %c0_i32_1 = arith.constant 0 : i32
    return %c0_i32, %c0_i32_0 : i32, i32
  }
  func.func @transform_6(%arg0: i32) -> (i32, i32) {
    %c0_i32 = arith.constant 0 : i32
    %c0_i32_0 = arith.constant 0 : i32
    %c0_i32_1 = arith.constant 0 : i32
    return %c0_i32, %c0_i32_0 : i32, i32
  }
  func.func @transform_7(%arg0: i32) -> (i32, i32) {
    %c0_i32 = arith.constant 0 : i32
    %c0_i32_0 = arith.constant 0 : i32
    %c0_i32_1 = arith.constant 0 : i32
    return %c0_i32, %c0_i32_0 : i32, i32
  }
  func.func @transform_8(%arg0: i32) -> (i32, i32) {
    %c0_i32 = arith.constant 0 : i32
    %c0_i32_0 = arith.constant 0 : i32
    %c0_i32_1 = arith.constant 0 : i32
    return %c0_i32, %c0_i32_0 : i32, i32
  }
  func.func @transform_9(%arg0: i32) -> (i32, i32) {
    %c0_i32 = arith.constant 0 : i32
    %c0_i32_0 = arith.constant 0 : i32
    return %arg0, %c0_i32 : i32, i32
  }
}

</mosaic_0001>

<bundles_post_ra>
// kernel: tpu_custom_call.1
= control target key start
LH: loop header
LB: loop body
LE: loop exit
PB: predicated region body
PF: predicated region fallthrough
CT: control target
= control target key end

     0   :  { %14 = vsyncpa [#allocation3], 0  ;;  %s1638_s0 = inlined_call_operand.hbm [shape: f32[8,128], index: 0, kind: input, shape index: {}]   ;;  %s1639_s1 = inlined_call_operand.hbm [shape: f32[128,128], index: 1, kind: input, shape index: {}]   ;;  %s1640_s2 = inlined_call_operand.vmem [shape: f32[1,128], index: 2, kind: input, shape index: {}]   ;;  %s1641_s3 = inlined_call_operand.hbm [shape: f32[128,512], index: 3, kind: input, shape index: {}]   ;;  %s1642_s4 = inlined_call_operand.vmem [shape: f32[1,512], index: 4, kind: input, shape index: {}]   ;;  %s1643_s5 = inlined_call_operand.hbm [shape: f32[512,512], index: 5, kind: input, shape index: {}]   ;;  %s1644_s6 = inlined_call_operand.vmem [shape: f32[1,512], index: 6, kind: input, shape index: {}]   ;;  %s1645_s7 = inlined_call_operand.hbm [shape: f32[512,128], index: 7, kind: input, shape index: {}]   ;;  %s1646_s8 = inlined_call_operand.vmem [shape: f32[1,128], index: 8, kind: input, shape index: {}]   ;;  %s1647_s9 = inlined_call_operand.hbm [shape: f32[8,128], index: 9, kind: output, shape index: {}]  }
   0x1   :  { %15 = vsyncpa [#allocation6], 0 }
   0x2   :  { %16 = vsyncpa [#allocation9], 0 }
   0x3   :  { %17 = vsyncpa [#allocation4], 0  ;;  %s1485_s30 = smov [#allocation5]  }
   0x4   :  { %s33_s10 = sshll.u32 %s1485_s30, 4  ;;  %s34_s10 = int_to_ptr.vmem [resolvable:$true] %s33_s10 }
   0x5   :  { %s1365_s11 = scalar_lea.vmem %s34_s10, 2048  ;;  %p1370_p1 = scmp.lt.s32.totalorder %s34_s10, %s34_s10 }
   0x6   :  { %p1366_p0 = scmp.ne.s32.totalorder %s34_s10, %s1365_s11  ;;  %p1371_p2 = scmp.lt.s32.totalorder %s1365_s11, %s1365_s11 }
   0x8   :  { %p1372_p3 = por %p1371_p2, %p1370_p1 }
   0xa   :  { %p1373_p4 = pnand %p1372_p3, %p1366_p0 }
   0xc   :  { %1376 = shalt.err (!%p1373_p4)
}
   0xd   :  { %s1486_s12 = smov 128   ;;  %s1487_s13 = smov 8  }
   0xe   :  { %39 = dma.hbm_to_vmem [thread:$0]  %s1639_s1, 2048, %s34_s10, [#allocation6], %s1486_s12, %s1486_s12, %s1487_s13  }
   0xf   :  { %s1488_s16 = smov [#allocation8]   ;;  %s1489_s18 = smov [#allocation2]  }
  0x10   :  { %s61_s17 = sshll.u32 %s1488_s16, 4  ;;  %s24_s19 = sshll.u32 %s1489_s18, 4  ;;  %s62_s17 = int_to_ptr.vmem [resolvable:$true] %s61_s17  ;;  %s25_s19 = int_to_ptr.vmem [resolvable:$true] %s24_s19 }
  0x11   :  { %s1385_s20 = scalar_lea.vmem %s62_s17, 32768  ;;  %p1390_p6 = scmp.lt.s32.totalorder %s62_s17, %s62_s17 }
  0x12   :  { %p1386_p5 = scmp.ne.s32.totalorder %s62_s17, %s1385_s20  ;;  %p1391_p7 = scmp.lt.s32.totalorder %s1385_s20, %s1385_s20 }
  0x14   :  { %p1392_p8 = por %p1391_p7, %p1390_p6 }
  0x16   :  { %p1393_p9 = pnand %p1392_p8, %p1386_p5 }
  0x18   :  { %1396 = shalt.err (!%p1393_p9)
}
  0x19   :  { %s1490_s21 = smov 512   ;;  %s1491_s22 = smov 32  }
  0x1a   :  { %67 = dma.hbm_to_vmem [thread:$0]  %s1643_s5, 32768, %s62_s17, [#allocation9], %s1490_s21, %s1490_s21, %s1491_s22  }
  0x1b   :  { %s1405_s1 = scalar_lea.vmem %s25_s19, 128  ;;  %p1410_p11 = scmp.lt.s32.totalorder %s25_s19, %s25_s19 }
  0x1c   :  { %p1406_p10 = scmp.ne.s32.totalorder %s25_s19, %s1405_s1  ;;  %p1411_p12 = scmp.lt.s32.totalorder %s1405_s1, %s1405_s1 }
  0x1e   :  { %p1412_p13 = por %p1411_p12, %p1410_p11 }
  0x20   :  { %p1413_p0 = pnand %p1412_p13, %p1406_p10 }
  0x22   :  { %1416 = shalt.err (!%p1413_p0)
}
  0x23   :  { %27 = dma.hbm_to_vmem [thread:$0]  %s1638_s0, 128, %s25_s19, [#allocation3]  }
  0x24   :  { %s1492_s27 = smov [#allocation7]   ;;  %s1493_s29 = smov [#allocation10]  }
  0x25   :  { %s47_s28 = sshll.u32 %s1492_s27, 4  ;;  %s75_s30 = sshll.u32 %s1493_s29, 4  ;;  %s48_s28 = int_to_ptr.vmem [resolvable:$true] %s47_s28  ;;  %s76_s30 = int_to_ptr.vmem [resolvable:$true] %s75_s30 }
  0x26   :  { %s1425_s10 = scalar_lea.vmem %s48_s28, 8192  ;;  %p1430_p2 = scmp.lt.s32.totalorder %s48_s28, %s48_s28 }
  0x27   :  { %p1426_p1 = scmp.ne.s32.totalorder %s48_s28, %s1425_s10  ;;  %p1431_p3 = scmp.lt.s32.totalorder %s1425_s10, %s1425_s10 }
  0x29   :  { %p1432_p4 = por %p1431_p3, %p1430_p2 }
  0x2b   :  { %p1433_p5 = pnand %p1432_p4, %p1426_p1 }
  0x2d   :  { %1436 = shalt.err (!%p1433_p5)
}
  0x2e   :  { %53 = dma.hbm_to_vmem [thread:$0]  %s1641_s3, 8192, %s48_s28, [#allocation6], %s1490_s21, %s1490_s21, %s1491_s22  }
  0x2f   :  { %s1445_s14 = scalar_lea.vmem %s76_s30, 8192  ;;  %p1450_p7 = scmp.lt.s32.totalorder %s76_s30, %s76_s30 }
  0x30   :  { %p1446_p6 = scmp.ne.s32.totalorder %s76_s30, %s1445_s14  ;;  %p1451_p8 = scmp.lt.s32.totalorder %s1445_s14, %s1445_s14 }
  0x32   :  { %p1452_p9 = por %p1451_p8, %p1450_p7 }
  0x34   :  { %p1453_p10 = pnand %p1452_p9, %p1446_p6 }
  0x36   :  { %1456 = shalt.err (!%p1453_p10)
}
  0x37   :  { %81 = dma.hbm_to_vmem [thread:$0]  %s1645_s7, 8192, %s76_s30, [#allocation9], %s1486_s12, %s1486_s12, %s1487_s13  }
  0x38   :  { %1477 = dma.done.wait [#allocation3], 128  }
  0x39   :  { %1478 = vsyncadd [#allocation3], 4294967168 }
  0x3a   :  { %1479 = dma.done.wait [#allocation6], 10240  }
  0x3b   :  { %1480 = vsyncadd [#allocation6], 4294957056 }
  0x3c   :  { %1481 = dma.done.wait [#allocation9], 40960  }
  0x3d   :  { %1482 = vsyncadd [#allocation9], 4294926336  ;;  %v1494_v0 = vmov 0.0   ;;  %vm1495_vm0 = vmmov 0   ;;  %v115_v1 = vld [vmem:[#allocation5 + $0x78] sm:$0xff]  ;;  %v114_v2 = vld [vmem:[#allocation5 + $0x70] sm:$0xff] }
  0x3e   :  { %1310 = vmatprep.subr.mxu0 %v1494_v0  ;;  %1342 = vmatprep.mubr.msk.f32.mxu0 %vm1495_vm0, %v1494_v0  ;;  %v113_v3 = vld [vmem:[#allocation5 + $0x68] sm:$0xff]  ;;  %v112_v4 = vld [vmem:[#allocation5 + $0x60] sm:$0xff]  ;;  %v111_v6 = vld [vmem:[#allocation5 + $0x58] sm:$0xff]  ;;  %s1496_s17 = smov [#allocation11]  }
  0x3f   :  { %344 = vmatprep.mubr.f32.mxu1 %v1494_v0  ;;  %1311 = vmatpush3.msra.mxu0 %v115_v1  ;;  %v255_v5 = vld [vmem:[#allocation7 + $0x1e8] sm:$0xff]  ;;  %v254_v7 = vld [vmem:[#allocation7 + $0x1e0] sm:$0xff]  ;;  %v110_v10 = vld [vmem:[#allocation5 + $0x50] sm:$0xff]  ;;  %s1210_s18 = sshll.u32 %s1496_s17, 4  ;;  %s1211_s18 = int_to_ptr.vmem [resolvable:$true] %s1210_s18 }
  0x40   :  { %1312 = vmatprep.subr.mxu0 %v1494_v0  ;;  %280 = vmatprep.subr.mxu1 %v255_v5  ;;  %v251_v8 = vld [vmem:[#allocation7 + $0x1c8] sm:$0xff]  ;;  %v250_v9 = vld [vmem:[#allocation7 + $0x1c0] sm:$0xff]  ;;  %v107_v20 = vld [vmem:[#allocation5 + $0x38] sm:$0xff]  ;;  %s1457_s19 = scalar_lea.vmem %s1211_s18, 128  ;;  %p1462_p12 = scmp.lt.s32.totalorder %s1211_s18, %s1211_s18 }
  0x41   :  { %1313 = vmatpush3.msra.mxu0 %v114_v2  ;;  %281 = vmatpush1.msra.mxu1 %v254_v7  ;;  %v247_v11 = vld [vmem:[#allocation7 + $0x1a8] sm:$0xff]  ;;  %v246_v12 = vld [vmem:[#allocation7 + $0x1a0] sm:$0xff]  ;;  %v106_v23 = vld [vmem:[#allocation5 + $0x30] sm:$0xff]  ;;  %p1458_p11 = scmp.ne.s32.totalorder %s1211_s18, %s1457_s19  ;;  %p1463_p13 = scmp.lt.s32.totalorder %s1457_s19, %s1457_s19 }
  0x42   :  { %1314 = vmatprep.subr.mxu0 %v1494_v0  ;;  %282 = vmatprep.subr.mxu1 %v251_v8  ;;  %v243_v13 = vld [vmem:[#allocation7 + $0x188] sm:$0xff]  ;;  %v242_v15 = vld [vmem:[#allocation7 + $0x180] sm:$0xff]  ;;  %v103_v32 = vld [vmem:[#allocation5 + $0x18] sm:$0xff] }
  0x43   :  { %1315 = vmatpush3.msra.mxu0 %v113_v3  ;;  %283 = vmatpush1.msra.mxu1 %v250_v9  ;;  %v109_v14 = vld [vmem:[#allocation5 + $0x48] sm:$0xff]  ;;  %v108_v17 = vld [vmem:[#allocation5 + $0x40] sm:$0xff]  ;;  %v102_v35 = vld [vmem:[#allocation5 + $0x10] sm:$0xff]  ;;  %p1464_p0 = por %p1463_p13, %p1462_p12 }
  0x44   :  { %1316 = vmatprep.subr.mxu0 %v1494_v0  ;;  %284 = vmatprep.subr.mxu1 %v247_v11  ;;  %v239_v16 = vld [vmem:[#allocation7 + $0x168] sm:$0xff]  ;;  %v238_v18 = vld [vmem:[#allocation7 + $0x160] sm:$0xff]  ;;  %v99_v43 = vld [vmem:[#allocation2] sm:$0xff] }
  0x45   :  { %1317 = vmatpush3.msra.mxu0 %v112_v4  ;;  %285 = vmatpush1.msra.mxu1 %v246_v12  ;;  %v235_v19 = vld [vmem:[#allocation7 + $0x148] sm:$0xff]  ;;  %v234_v21 = vld [vmem:[#allocation7 + $0x140] sm:$0xff]  ;;  %v257_v44 = vld [vmem:[#allocation7 + $0x1f8] sm:$0xff]  ;;  %p1465_p1 = pnand %p1464_p0, %p1458_p11 }
  0x46   :  { %1318 = vmatprep.subr.mxu0 %v1494_v0  ;;  %286 = vmatprep.subr.mxu1 %v243_v13  ;;  %v231_v22 = vld [vmem:[#allocation7 + $0x128] sm:$0xff]  ;;  %v230_v24 = vld [vmem:[#allocation7 + $0x120] sm:$0xff]  ;;  %v256_v45 = vld [vmem:[#allocation7 + $0x1f0] sm:$0xff] }
  0x47   :  { %1319 = vmatpush3.msra.mxu0 %v111_v6  ;;  %287 = vmatpush1.msra.mxu1 %v242_v15  ;;  %v227_v25 = vld [vmem:[#allocation7 + $0x108] sm:$0xff]  ;;  %v226_v27 = vld [vmem:[#allocation7 + $0x100] sm:$0xff]  ;;  %v253_v47 = vld [vmem:[#allocation7 + $0x1d8] sm:$0xff] }
  0x48   :  { %1320 = vmatprep.subr.mxu0 %v1494_v0  ;;  %288 = vmatprep.subr.mxu1 %v239_v16  ;;  %v105_v26 = vld [vmem:[#allocation5 + $0x28] sm:$0xff]  ;;  %v104_v29 = vld [vmem:[#allocation5 + $0x20] sm:$0xff]  ;;  %v252_v48 = vld [vmem:[#allocation7 + $0x1d0] sm:$0xff] }
  0x49   :  { %1321 = vmatpush3.msra.mxu0 %v110_v10  ;;  %289 = vmatpush1.msra.mxu1 %v238_v18  ;;  %v223_v28 = vld [vmem:[#allocation7 + $0xe8] sm:$0xff]  ;;  %v222_v30 = vld [vmem:[#allocation7 + $0xe0] sm:$0xff]  ;;  %v249_v49 = vld [vmem:[#allocation7 + $0x1b8] sm:$0xff] }
  0x4a   :  { %1322 = vmatprep.subr.mxu0 %v1494_v0  ;;  %290 = vmatprep.subr.mxu1 %v235_v19  ;;  %v219_v31 = vld [vmem:[#allocation7 + $0xc8] sm:$0xff]  ;;  %v218_v33 = vld [vmem:[#allocation7 + $0xc0] sm:$0xff]  ;;  %v248_v50 = vld [vmem:[#allocation7 + $0x1b0] sm:$0xff] }
  0x4b   :  { %1323 = vmatpush3.msra.mxu0 %v109_v14  ;;  %291 = vmatpush1.msra.mxu1 %v234_v21  ;;  %v215_v34 = vld [vmem:[#allocation7 + $0xa8] sm:$0xff]  ;;  %v214_v36 = vld [vmem:[#allocation7 + $0xa0] sm:$0xff]  ;;  %v245_v51 = vld [vmem:[#allocation7 + $0x198] sm:$0xff] }
  0x4c   :  { %1324 = vmatprep.subr.mxu0 %v1494_v0  ;;  %292 = vmatprep.subr.mxu1 %v231_v22  ;;  %v211_v37 = vld [vmem:[#allocation7 + $0x88] sm:$0xff]  ;;  %v210_v39 = vld [vmem:[#allocation7 + $0x80] sm:$0xff]  ;;  %v244_v52 = vld [vmem:[#allocation7 + $0x190] sm:$0xff] }
  0x4d   :  { %1325 = vmatpush3.msra.mxu0 %v108_v17  ;;  %293 = vmatpush1.msra.mxu1 %v230_v24  ;;  %v101_v38 = vld [vmem:[#allocation5 + $0x8] sm:$0xff]  ;;  %v100_v41 = vld [vmem:[#allocation5] sm:$0xff]  ;;  %v241_v53 = vld [vmem:[#allocation7 + $0x178] sm:$0xff] }
  0x4e   :  { %1326 = vmatprep.subr.mxu0 %v1494_v0  ;;  %294 = vmatprep.subr.mxu1 %v227_v25  ;;  %v207_v40 = vld [vmem:[#allocation7 + $0x68] sm:$0xff]  ;;  %v206_v42 = vld [vmem:[#allocation7 + $0x60] sm:$0xff]  ;;  %v240_v54 = vld [vmem:[#allocation7 + $0x170] sm:$0xff] }
  0x4f   :  { %1327 = vmatpush3.msra.mxu0 %v107_v20  ;;  %295 = vmatpush1.msra.mxu1 %v226_v27  ;;  %v203_v46 = vld [vmem:[#allocation7 + $0x48] sm:$0xff]  ;;  %v237_v55 = vld [vmem:[#allocation7 + $0x158] sm:$0xff]  ;;  %v236_v56 = vld [vmem:[#allocation7 + $0x150] sm:$0xff] }
  0x50   :  { %1328 = vmatprep.subr.mxu0 %v1494_v0  ;;  %296 = vmatprep.subr.mxu1 %v223_v28  ;;  %v233_v57 = vld [vmem:[#allocation7 + $0x138] sm:$0xff]  ;;  %v232_v58 = vld [vmem:[#allocation7 + $0x130] sm:$0xff]  ;;  %v202_v8 = vld [vmem:[#allocation7 + $0x40] sm:$0xff] }
  0x51   :  { %1329 = vmatpush3.msra.mxu0 %v106_v23  ;;  %297 = vmatpush1.msra.mxu1 %v222_v30  ;;  %v229_v59 = vld [vmem:[#allocation7 + $0x118] sm:$0xff]  ;;  %v228_v60 = vld [vmem:[#allocation7 + $0x110] sm:$0xff]  ;;  %v199_v10 = vld [vmem:[#allocation7 + $0x28] sm:$0xff] }
  0x52   :  { %1330 = vmatprep.subr.mxu0 %v1494_v0  ;;  %298 = vmatprep.subr.mxu1 %v219_v31  ;;  %v225_v61 = vld [vmem:[#allocation7 + $0xf8] sm:$0xff]  ;;  %v224_v62 = vld [vmem:[#allocation7 + $0xf0] sm:$0xff]  ;;  %v198_v12 = vld [vmem:[#allocation7 + $0x20] sm:$0xff] }
  0x53   :  { %1331 = vmatpush3.msra.mxu0 %v105_v26  ;;  %299 = vmatpush1.msra.mxu1 %v218_v33  ;;  %v221_v63 = vld [vmem:[#allocation7 + $0xd8] sm:$0xff]  ;;  %v216_v2 = vld [vmem:[#allocation7 + $0xb0] sm:$0xff]  ;;  %v195_v14 = vld [vmem:[#allocation7 + $0x8] sm:$0xff] }
  0x54   :  { %1332 = vmatprep.subr.mxu0 %v1494_v0  ;;  %300 = vmatprep.subr.mxu1 %v215_v34  ;;  %v217_v1 = vld [vmem:[#allocation7 + $0xb8] sm:$0xff]  ;;  %v212_v4 = vld [vmem:[#allocation7 + $0x90] sm:$0xff]  ;;  %v194_v16 = vld [vmem:[#allocation7] sm:$0xff] }
  0x55   :  { %1333 = vmatpush3.msra.mxu0 %v104_v29  ;;  %301 = vmatpush1.msra.mxu1 %v214_v36  ;;  %v213_v3 = vld [vmem:[#allocation7 + $0x98] sm:$0xff]  ;;  %v208_v6 = vld [vmem:[#allocation7 + $0x70] sm:$0xff]  ;;  %v487_v18 = vld [vmem:[#allocation8 + $0x1e8] sm:$0xff] }
  0x56   :  { %1334 = vmatprep.subr.mxu0 %v1494_v0  ;;  %302 = vmatprep.subr.mxu1 %v211_v37  ;;  %v209_v5 = vld [vmem:[#allocation7 + $0x78] sm:$0xff]  ;;  %v204_v9 = vld [vmem:[#allocation7 + $0x50] sm:$0xff]  ;;  %v615_v19 = vld [vmem:[#allocation8 + $0x5e8] sm:$0xff] }
  0x57   :  { %1335 = vmatpush3.msra.mxu0 %v103_v32  ;;  %303 = vmatpush1.msra.mxu1 %v210_v39  ;;  %v205_v7 = vld [vmem:[#allocation7 + $0x58] sm:$0xff]  ;;  %v200_v13 = vld [vmem:[#allocation7 + $0x30] sm:$0xff]  ;;  %v486_v25 = vld [vmem:[#allocation8 + $0x1e0] sm:$0xff] }
  0x58   :  { %1336 = vmatprep.subr.mxu0 %v1494_v0  ;;  %304 = vmatprep.subr.mxu1 %v207_v40  ;;  %v201_v11 = vld [vmem:[#allocation7 + $0x38] sm:$0xff]  ;;  %v196_v17 = vld [vmem:[#allocation7 + $0x10] sm:$0xff]  ;;  %v614_v26 = vld [vmem:[#allocation8 + $0x5e0] sm:$0xff] }
  0x59   :  { %1337 = vmatpush3.msra.mxu0 %v102_v35  ;;  %305 = vmatpush1.msra.mxu1 %v206_v42  ;;  %v197_v15 = vld [vmem:[#allocation7 + $0x18] sm:$0xff]  ;;  %v483_v27 = vld [vmem:[#allocation8 + $0x1c8] sm:$0xff]  ;;  %v482_v29 = vld [vmem:[#allocation8 + $0x1c0] sm:$0xff] }
  0x5a   :  { %1338 = vmatprep.subr.mxu0 %v1494_v0  ;;  %306 = vmatprep.subr.mxu1 %v203_v46  ;;  %v1221_v20 = vld [vmem:[%s1640_s2] ss:$0 sm:$0xff]  ;;  %v611_v28 = vld [vmem:[#allocation8 + $0x5c8] sm:$0xff]  ;;  %v610_v30 = vld [vmem:[#allocation8 + $0x5c0] sm:$0xff] }
  0x5b   :  { %1339 = vmatpush3.msra.mxu0 %v101_v38  ;;  %307 = vmatpush1.msra.mxu1 %v202_v8  ;;  %v479_v31 = vld [vmem:[#allocation8 + $0x1a8] sm:$0xff]  ;;  %v478_v33 = vld [vmem:[#allocation8 + $0x1a0] sm:$0xff] }
  0x5c   :  { %1340 = vmatprep.subr.mxu0 %v1494_v0  ;;  %308 = vmatprep.subr.mxu1 %v199_v10  ;;  %v607_v32 = vld [vmem:[#allocation8 + $0x5a8] sm:$0xff]  ;;  %v606_v34 = vld [vmem:[#allocation8 + $0x5a0] sm:$0xff] }
  0x5d   :  { %1341 = vmatpush3.msra.mxu0 %v100_v41  ;;  %309 = vmatpush1.msra.mxu1 %v198_v12  ;;  %v475_v35 = vld [vmem:[#allocation8 + $0x188] sm:$0xff]  ;;  %v474_v37 = vld [vmem:[#allocation8 + $0x180] sm:$0xff] }
  0x5e   :  { %1343 = vmatmul.mubr.f32.vlgmr.msra.gmra.mxu0 %v99_v43  ;;  %351 = vmatprep.subr.mxu0 %v257_v44  ;;  %v603_v36 = vld [vmem:[#allocation8 + $0x588] sm:$0xff]  ;;  %v602_v38 = vld [vmem:[#allocation8 + $0x580] sm:$0xff] }
  0x5f   :  { %352 = vmatpush1.msra.mxu0 %v256_v45  ;;  %415 = vmatprep.mubr.f32.mxu0 %v1494_v0  ;;  %v220_v0 = vld [vmem:[#allocation7 + $0xd0] sm:$0xff]  ;;  %v471_v39 = vld [vmem:[#allocation8 + $0x168] sm:$0xff]  ;;  %v470_v41 = vld [vmem:[#allocation8 + $0x160] sm:$0xff] }
  0x60   :  { %353 = vmatprep.subr.mxu0 %v253_v47  ;;  %310 = vmatprep.subr.mxu1 %v195_v14  ;;  %v599_v40 = vld [vmem:[#allocation8 + $0x568] sm:$0xff]  ;;  %v598_v42 = vld [vmem:[#allocation8 + $0x560] sm:$0xff] }
  0x61   :  { %354 = vmatpush1.msra.mxu0 %v252_v48  ;;  %311 = vmatpush1.msra.mxu1 %v194_v16  ;;  %v467_v43 = vld [vmem:[#allocation8 + $0x148] sm:$0xff]  ;;  %v466_v45 = vld [vmem:[#allocation8 + $0x140] sm:$0xff] }
  0x62   :  { %355 = vmatprep.subr.mxu0 %v249_v49  ;;  %704 = vmatprep.subr.mxu1 %v487_v18  ;;  %v595_v44 = vld [vmem:[#allocation8 + $0x548] sm:$0xff]  ;;  %v594_v46 = vld [vmem:[#allocation8 + $0x540] sm:$0xff] }
  0x63   :  { %356 = vmatpush1.msra.mxu0 %v248_v50  ;;  %v463_v47 = vld [vmem:[#allocation8 + $0x128] sm:$0xff]  ;;  %v462_v49 = vld [vmem:[#allocation8 + $0x120] sm:$0xff] }
  0x64   :  { %357 = vmatprep.subr.mxu0 %v245_v51  ;;  %v591_v48 = vld [vmem:[#allocation8 + $0x528] sm:$0xff]  ;;  %v590_v50 = vld [vmem:[#allocation8 + $0x520] sm:$0xff] }
  0x65   :  { %358 = vmatpush1.msra.mxu0 %v244_v52  ;;  %v459_v51 = vld [vmem:[#allocation8 + $0x108] sm:$0xff]  ;;  %v566_v10 = vld [vmem:[#allocation8 + $0x460] sm:$0xff] }
  0x66   :  { %359 = vmatprep.subr.mxu0 %v241_v53  ;;  %v587_v52 = vld [vmem:[#allocation8 + $0x508] sm:$0xff]  ;;  %v458_v53 = vld [vmem:[#allocation8 + $0x100] sm:$0xff] }
  0x67   :  { %360 = vmatpush1.msra.mxu0 %v240_v54  ;;  %v586_v54 = vld [vmem:[#allocation8 + $0x500] sm:$0xff]  ;;  %v567_v8 = vld [vmem:[#allocation8 + $0x468] sm:$0xff] }
  0x68   :  { %361 = vmatprep.subr.mxu0 %v237_v55  ;;  %v455_v55 = vld [vmem:[#allocation8 + $0xe8] sm:$0xff]  ;;  %v562_v14 = vld [vmem:[#allocation8 + $0x440] sm:$0xff] }
  0x69   :  { %362 = vmatpush1.msra.mxu0 %v236_v56  ;;  %v583_v56 = vld [vmem:[#allocation8 + $0x4e8] sm:$0xff]  ;;  %v558_v18 = vld [vmem:[#allocation8 + $0x420] sm:$0xff] }
  0x6a   :  { %363 = vmatprep.subr.mxu0 %v233_v57  ;;  %v454_v57 = vld [vmem:[#allocation8 + $0xe0] sm:$0xff]  ;;  %v563_v12 = vld [vmem:[#allocation8 + $0x448] sm:$0xff] }
  0x6b   :  { %364 = vmatpush1.msra.mxu0 %v232_v58  ;;  %v582_v58 = vld [vmem:[#allocation8 + $0x4e0] sm:$0xff]  ;;  %v559_v16 = vld [vmem:[#allocation8 + $0x428] sm:$0xff] }
  0x6c   :  { %365 = vmatprep.subr.mxu0 %v229_v59  ;;  %v451_v59 = vld [vmem:[#allocation8 + $0xc8] sm:$0xff] }
  0x6d   :  { %366 = vmatpush1.msra.mxu0 %v228_v60  ;;  %v579_v60 = vld [vmem:[#allocation8 + $0x4c8] sm:$0xff] }
  0x6e   :  { %367 = vmatprep.subr.mxu0 %v225_v61  ;;  %v450_v61 = vld [vmem:[#allocation8 + $0xc0] sm:$0xff] }
  0x6f   :  { %368 = vmatpush1.msra.mxu0 %v224_v62  ;;  %v578_v62 = vld [vmem:[#allocation8 + $0x4c0] sm:$0xff] }
  0x70   :  { %369 = vmatprep.subr.mxu0 %v221_v63  ;;  %v447_v63 = vld [vmem:[#allocation8 + $0xa8] sm:$0xff] }
  0x71   :  { %370 = vmatpush1.msra.mxu0 %v220_v0  ;;  %v575_v0 = vld [vmem:[#allocation8 + $0x4a8] sm:$0xff] }
  0x72   :  { %371 = vmatprep.subr.mxu0 %v217_v1  ;;  %v446_v1 = vld [vmem:[#allocation8 + $0xa0] sm:$0xff] }
  0x73   :  { %372 = vmatpush1.msra.mxu0 %v216_v2  ;;  %v574_v2 = vld [vmem:[#allocation8 + $0x4a0] sm:$0xff] }
  0x74   :  { %373 = vmatprep.subr.mxu0 %v213_v3  ;;  %v443_v3 = vld [vmem:[#allocation8 + $0x88] sm:$0xff] }
  0x75   :  { %374 = vmatpush1.msra.mxu0 %v212_v4  ;;  %v571_v4 = vld [vmem:[#allocation8 + $0x488] sm:$0xff] }
  0x76   :  { %375 = vmatprep.subr.mxu0 %v209_v5  ;;  %v442_v5 = vld [vmem:[#allocation8 + $0x80] sm:$0xff] }
  0x77   :  { %376 = vmatpush1.msra.mxu0 %v208_v6  ;;  %v570_v6 = vld [vmem:[#allocation8 + $0x480] sm:$0xff] }
  0x78   :  { %377 = vmatprep.subr.mxu0 %v205_v7  ;;  %v439_v7 = vld [vmem:[#allocation8 + $0x68] sm:$0xff] }
  0x79   :  { %378 = vmatpush1.msra.mxu0 %v204_v9  ;;  %v438_v9 = vld [vmem:[#allocation8 + $0x60] sm:$0xff] }
  0x7a   :  { %379 = vmatprep.subr.mxu0 %v201_v11  ;;  %v435_v11 = vld [vmem:[#allocation8 + $0x48] sm:$0xff] }
  0x7b   :  { %380 = vmatpush1.msra.mxu0 %v200_v13  ;;  %v434_v13 = vld [vmem:[#allocation8 + $0x40] sm:$0xff] }
  0x7c   :  { %381 = vmatprep.subr.mxu0 %v197_v15  ;;  %v431_v15 = vld [vmem:[#allocation8 + $0x28] sm:$0xff] }
  0x7d   :  { %382 = vmatpush1.msra.mxu0 %v196_v17  ;;  %v430_v17 = vld [vmem:[#allocation8 + $0x20] sm:$0xff] }
  0x7e   :  { %775 = vmatprep.subr.mxu0 %v615_v19  ;;  %v427_v19 = vld [vmem:[#allocation8 + $0x8] sm:$0xff] }
 0x11e   :  { %v189_v21 = vpop.f32.mrf.mxu0 }
 0x11f   :  { %v190_v22 = vadd.f32 %v1221_v20, %v189_v21  ;;  %v555_v20 = vld [vmem:[#allocation8 + $0x408] sm:$0xff]  ;;  %v426_v21 = vld [vmem:[#allocation8] sm:$0xff] }
 0x120   :  { %v1344_v23 = vpop.f32.mrf.mxu0 }
 0x121   :  { %v193_v24 = vmax.f32 %v190_v22, 0.0  ;;  %v554_v22 = vld [vmem:[#allocation8 + $0x400] sm:$0xff]  ;;  %v551_v23 = vld [vmem:[#allocation8 + $0x3e8] sm:$0xff] }
 0x123   :  { %345 = vmatmul.mubr.f32.vlgmr.msra.gmra.mxu1 %v193_v24  ;;  %416 = vmatmul.mubr.f32.vlgmr.msra.gmra.mxu0 %v193_v24  ;;  %v679_v24 = vld [vmem:[#allocation8 + $0x7e8] sm:$0xff] }
 0x124   :  { %705 = vmatpush1.msra.mxu1 %v486_v25  ;;  %776 = vmatpush1.msra.mxu0 %v614_v26  ;;  %v550_v25 = vld [vmem:[#allocation8 + $0x3e0] sm:$0xff] }
 0x125   :  { %706 = vmatprep.subr.mxu1 %v483_v27  ;;  %777 = vmatprep.subr.mxu0 %v611_v28  ;;  %v678_v26 = vld [vmem:[#allocation8 + $0x7e0] sm:$0xff]  ;;  %v547_v27 = vld [vmem:[#allocation8 + $0x3c8] sm:$0xff] }
 0x126   :  { %707 = vmatpush1.msra.mxu1 %v482_v29  ;;  %778 = vmatpush1.msra.mxu0 %v610_v30  ;;  %v675_v28 = vld [vmem:[#allocation8 + $0x7c8] sm:$0xff]  ;;  %v546_v29 = vld [vmem:[#allocation8 + $0x3c0] sm:$0xff] }
 0x127   :  { %708 = vmatprep.subr.mxu1 %v479_v31  ;;  %779 = vmatprep.subr.mxu0 %v607_v32  ;;  %v674_v30 = vld [vmem:[#allocation8 + $0x7c0] sm:$0xff]  ;;  %v543_v31 = vld [vmem:[#allocation8 + $0x3a8] sm:$0xff] }
 0x128   :  { %709 = vmatpush1.msra.mxu1 %v478_v33  ;;  %780 = vmatpush1.msra.mxu0 %v606_v34  ;;  %v671_v32 = vld [vmem:[#allocation8 + $0x7a8] sm:$0xff]  ;;  %v542_v33 = vld [vmem:[#allocation8 + $0x3a0] sm:$0xff] }
 0x129   :  { %710 = vmatprep.subr.mxu1 %v475_v35  ;;  %781 = vmatprep.subr.mxu0 %v603_v36  ;;  %v670_v34 = vld [vmem:[#allocation8 + $0x7a0] sm:$0xff]  ;;  %v539_v35 = vld [vmem:[#allocation8 + $0x388] sm:$0xff] }
 0x12a   :  { %711 = vmatpush1.msra.mxu1 %v474_v37  ;;  %782 = vmatpush1.msra.mxu0 %v602_v38  ;;  %v667_v36 = vld [vmem:[#allocation8 + $0x788] sm:$0xff]  ;;  %v538_v37 = vld [vmem:[#allocation8 + $0x380] sm:$0xff] }
 0x12b   :  { %712 = vmatprep.subr.mxu1 %v471_v39  ;;  %783 = vmatprep.subr.mxu0 %v599_v40  ;;  %v666_v38 = vld [vmem:[#allocation8 + $0x780] sm:$0xff]  ;;  %v535_v39 = vld [vmem:[#allocation8 + $0x368] sm:$0xff] }
 0x12c   :  { %713 = vmatpush1.msra.mxu1 %v470_v41  ;;  %784 = vmatpush1.msra.mxu0 %v598_v42  ;;  %v663_v40 = vld [vmem:[#allocation8 + $0x768] sm:$0xff]  ;;  %v534_v41 = vld [vmem:[#allocation8 + $0x360] sm:$0xff] }
 0x12d   :  { %714 = vmatprep.subr.mxu1 %v467_v43  ;;  %785 = vmatprep.subr.mxu0 %v595_v44  ;;  %v662_v42 = vld [vmem:[#allocation8 + $0x760] sm:$0xff]  ;;  %v531_v43 = vld [vmem:[#allocation8 + $0x348] sm:$0xff] }
 0x12e   :  { %715 = vmatpush1.msra.mxu1 %v466_v45  ;;  %786 = vmatpush1.msra.mxu0 %v594_v46  ;;  %v659_v44 = vld [vmem:[#allocation8 + $0x748] sm:$0xff]  ;;  %v530_v45 = vld [vmem:[#allocation8 + $0x340] sm:$0xff] }
 0x12f   :  { %716 = vmatprep.subr.mxu1 %v463_v47  ;;  %787 = vmatprep.subr.mxu0 %v591_v48  ;;  %v658_v46 = vld [vmem:[#allocation8 + $0x740] sm:$0xff]  ;;  %v527_v47 = vld [vmem:[#allocation8 + $0x328] sm:$0xff] }
 0x130   :  { %717 = vmatpush1.msra.mxu1 %v462_v49  ;;  %788 = vmatpush1.msra.mxu0 %v590_v50  ;;  %v655_v48 = vld [vmem:[#allocation8 + $0x728] sm:$0xff]  ;;  %v526_v49 = vld [vmem:[#allocation8 + $0x320] sm:$0xff] }
 0x131   :  { %718 = vmatprep.subr.mxu1 %v459_v51  ;;  %789 = vmatprep.subr.mxu0 %v587_v52  ;;  %v654_v50 = vld [vmem:[#allocation8 + $0x720] sm:$0xff]  ;;  %v523_v51 = vld [vmem:[#allocation8 + $0x308] sm:$0xff] }
 0x132   :  { %719 = vmatpush1.msra.mxu1 %v458_v53  ;;  %790 = vmatpush1.msra.mxu0 %v586_v54  ;;  %v651_v52 = vld [vmem:[#allocation8 + $0x708] sm:$0xff]  ;;  %v522_v53 = vld [vmem:[#allocation8 + $0x300] sm:$0xff] }
 0x133   :  { %720 = vmatprep.subr.mxu1 %v455_v55  ;;  %791 = vmatprep.subr.mxu0 %v583_v56  ;;  %v650_v54 = vld [vmem:[#allocation8 + $0x700] sm:$0xff]  ;;  %v519_v55 = vld [vmem:[#allocation8 + $0x2e8] sm:$0xff] }
 0x134   :  { %721 = vmatpush1.msra.mxu1 %v454_v57  ;;  %792 = vmatpush1.msra.mxu0 %v582_v58  ;;  %v647_v56 = vld [vmem:[#allocation8 + $0x6e8] sm:$0xff]  ;;  %v518_v57 = vld [vmem:[#allocation8 + $0x2e0] sm:$0xff] }
 0x135   :  { %722 = vmatprep.subr.mxu1 %v451_v59  ;;  %793 = vmatprep.subr.mxu0 %v579_v60  ;;  %v646_v58 = vld [vmem:[#allocation8 + $0x6e0] sm:$0xff]  ;;  %v515_v59 = vld [vmem:[#allocation8 + $0x2c8] sm:$0xff] }
 0x136   :  { %723 = vmatpush1.msra.mxu1 %v450_v61  ;;  %794 = vmatpush1.msra.mxu0 %v578_v62  ;;  %v643_v60 = vld [vmem:[#allocation8 + $0x6c8] sm:$0xff]  ;;  %v514_v61 = vld [vmem:[#allocation8 + $0x2c0] sm:$0xff] }
 0x137   :  { %724 = vmatprep.subr.mxu1 %v447_v63  ;;  %795 = vmatprep.subr.mxu0 %v575_v0  ;;  %v642_v62 = vld [vmem:[#allocation8 + $0x6c0] sm:$0xff]  ;;  %v511_v63 = vld [vmem:[#allocation8 + $0x2a8] sm:$0xff] }
 0x138   :  { %725 = vmatpush1.msra.mxu1 %v446_v1  ;;  %796 = vmatpush1.msra.mxu0 %v574_v2  ;;  %v639_v0 = vld [vmem:[#allocation8 + $0x6a8] sm:$0xff]  ;;  %v510_v1 = vld [vmem:[#allocation8 + $0x2a0] sm:$0xff] }
 0x139   :  { %726 = vmatprep.subr.mxu1 %v443_v3  ;;  %797 = vmatprep.subr.mxu0 %v571_v4  ;;  %v638_v2 = vld [vmem:[#allocation8 + $0x6a0] sm:$0xff]  ;;  %v507_v3 = vld [vmem:[#allocation8 + $0x288] sm:$0xff] }
 0x13a   :  { %727 = vmatpush1.msra.mxu1 %v442_v5  ;;  %798 = vmatpush1.msra.mxu0 %v570_v6  ;;  %v635_v4 = vld [vmem:[#allocation8 + $0x688] sm:$0xff]  ;;  %v506_v5 = vld [vmem:[#allocation8 + $0x280] sm:$0xff] }
 0x13b   :  { %728 = vmatprep.subr.mxu1 %v439_v7  ;;  %799 = vmatprep.subr.mxu0 %v567_v8  ;;  %v634_v6 = vld [vmem:[#allocation8 + $0x680] sm:$0xff]  ;;  %v503_v7 = vld [vmem:[#allocation8 + $0x268] sm:$0xff] }
 0x13c   :  { %729 = vmatpush1.msra.mxu1 %v438_v9  ;;  %800 = vmatpush1.msra.mxu0 %v566_v10  ;;  %v631_v8 = vld [vmem:[#allocation8 + $0x668] sm:$0xff]  ;;  %v502_v9 = vld [vmem:[#allocation8 + $0x260] sm:$0xff] }
 0x13d   :  { %730 = vmatprep.subr.mxu1 %v435_v11  ;;  %801 = vmatprep.subr.mxu0 %v563_v12  ;;  %v630_v10 = vld [vmem:[#allocation8 + $0x660] sm:$0xff]  ;;  %v499_v11 = vld [vmem:[#allocation8 + $0x248] sm:$0xff] }
 0x13e   :  { %731 = vmatpush1.msra.mxu1 %v434_v13  ;;  %802 = vmatpush1.msra.mxu0 %v562_v14  ;;  %v627_v12 = vld [vmem:[#allocation8 + $0x648] sm:$0xff]  ;;  %v498_v13 = vld [vmem:[#allocation8 + $0x240] sm:$0xff] }
 0x13f   :  { %732 = vmatprep.subr.mxu1 %v431_v15  ;;  %803 = vmatprep.subr.mxu0 %v559_v16  ;;  %v626_v14 = vld [vmem:[#allocation8 + $0x640] sm:$0xff]  ;;  %v495_v15 = vld [vmem:[#allocation8 + $0x228] sm:$0xff] }
 0x140   :  { %733 = vmatpush1.msra.mxu1 %v430_v17  ;;  %804 = vmatpush1.msra.mxu0 %v558_v18  ;;  %v623_v16 = vld [vmem:[#allocation8 + $0x628] sm:$0xff]  ;;  %v494_v17 = vld [vmem:[#allocation8 + $0x220] sm:$0xff] }
 0x141   :  { %734 = vmatprep.subr.mxu1 %v427_v19  ;;  %805 = vmatprep.subr.mxu0 %v555_v20  ;;  %v622_v18 = vld [vmem:[#allocation8 + $0x620] sm:$0xff]  ;;  %v491_v19 = vld [vmem:[#allocation8 + $0x208] sm:$0xff] }
 0x142   :  { %735 = vmatpush1.msra.mxu1 %v426_v21  ;;  %806 = vmatpush1.msra.mxu0 %v554_v22  ;;  %v619_v20 = vld [vmem:[#allocation8 + $0x608] sm:$0xff]  ;;  %v490_v21 = vld [vmem:[#allocation8 + $0x200] sm:$0xff] }
 0x143   :  { %736 = vmatprep.subr.mxu1 %v551_v23  ;;  %807 = vmatprep.subr.mxu0 %v679_v24  ;;  %v618_v22 = vld [vmem:[#allocation8 + $0x600] sm:$0xff]  ;;  %v489_v23 = vld [vmem:[#allocation8 + $0x1f8] sm:$0xff] }
 0x144   :  { %737 = vmatpush2.msra.mxu1 %v550_v25  ;;  %808 = vmatpush2.msra.mxu0 %v678_v26  ;;  %v617_v24 = vld [vmem:[#allocation8 + $0x5f8] sm:$0xff]  ;;  %v260_v25 = vlaneseq }
 0x145   :  { %738 = vmatprep.subr.mxu1 %v547_v27  ;;  %809 = vmatprep.subr.mxu0 %v675_v28 }
 0x146   :  { %739 = vmatpush2.msra.mxu1 %v546_v29  ;;  %810 = vmatpush2.msra.mxu0 %v674_v30  ;;  %v1590_v26 = vshrl.u32 %v260_v25, 7  ;;  %v258_v29 = vld [vmem:[%s1642_s4] sm:$0xf]  ;;  %v576_v25 = vld [vmem:[#allocation8 + $0x4b0] sm:$0xff] }
 0x147   :  { %740 = vmatprep.subr.mxu1 %v543_v31  ;;  %811 = vmatprep.subr.mxu0 %v671_v32 }
 0x148   :  { %741 = vmatpush2.msra.mxu1 %v542_v33  ;;  %812 = vmatpush2.msra.mxu0 %v670_v34  ;;  %v262_v27 = vsub.s32 0, %v1590_v26  ;;  %v270_v28 = vsub.s32 2, %v1590_v26  ;;  %v266_v30 = vsub.s32 1, %v1590_v26  ;;  %v274_v31 = vsub.s32 3, %v1590_v26  ;;  %v1222_v26 = vld [vmem:[%s1646_s8] ss:$0 sm:$0xff] }
 0x149   :  { %742 = vmatprep.subr.mxu1 %v539_v35  ;;  %813 = vmatprep.subr.mxu0 %v667_v36 }
 0x14a   :  { %743 = vmatpush2.msra.mxu1 %v538_v37  ;;  %814 = vmatpush2.msra.mxu0 %v666_v38  ;;  %v263_v32 = vrot.slane %v258_v29, %v262_v27  ;;  %v271_v33 = vrot.slane %v258_v29, %v270_v28  ;;  %v267_v34 = vrot.slane %v258_v29, %v266_v30 }
 0x14b   :  { %744 = vmatprep.subr.mxu1 %v535_v39  ;;  %815 = vmatprep.subr.mxu0 %v663_v40  ;;  %v275_v35 = vrot.slane %v258_v29, %v274_v31  ;;  %v445_v29 = vld [vmem:[#allocation8 + $0x98] sm:$0xff] }
 0x14c   :  { %745 = vmatpush2.msra.mxu1 %v534_v41  ;;  %816 = vmatpush2.msra.mxu0 %v662_v42 }
 0x14d   :  { %746 = vmatprep.subr.mxu1 %v531_v43  ;;  %817 = vmatprep.subr.mxu0 %v659_v44 }
 0x14e   :  { %747 = vmatpush2.msra.mxu1 %v530_v45  ;;  %818 = vmatpush2.msra.mxu0 %v658_v46 }
 0x14f   :  { %748 = vmatprep.subr.mxu1 %v527_v47  ;;  %819 = vmatprep.subr.mxu0 %v655_v48  ;;  %v488_v48 = vld [vmem:[#allocation8 + $0x1f0] sm:$0xff] }
 0x150   :  { %749 = vmatpush2.msra.mxu1 %v526_v49  ;;  %820 = vmatpush2.msra.mxu0 %v654_v50  ;;  %v616_v49 = vld [vmem:[#allocation8 + $0x5f0] sm:$0xff]  ;;  %v485_v50 = vld [vmem:[#allocation8 + $0x1d8] sm:$0xff] }
 0x151   :  { %750 = vmatprep.subr.mxu1 %v523_v51  ;;  %821 = vmatprep.subr.mxu0 %v651_v52  ;;  %v613_v51 = vld [vmem:[#allocation8 + $0x5d8] sm:$0xff]  ;;  %v484_v52 = vld [vmem:[#allocation8 + $0x1d0] sm:$0xff] }
 0x152   :  { %751 = vmatpush2.msra.mxu1 %v522_v53  ;;  %822 = vmatpush2.msra.mxu0 %v650_v54  ;;  %v612_v53 = vld [vmem:[#allocation8 + $0x5d0] sm:$0xff]  ;;  %v481_v54 = vld [vmem:[#allocation8 + $0x1b8] sm:$0xff] }
 0x153   :  { %752 = vmatprep.subr.mxu1 %v519_v55  ;;  %823 = vmatprep.subr.mxu0 %v647_v56  ;;  %v609_v55 = vld [vmem:[#allocation8 + $0x5b8] sm:$0xff]  ;;  %v480_v56 = vld [vmem:[#allocation8 + $0x1b0] sm:$0xff] }
 0x154   :  { %753 = vmatpush2.msra.mxu1 %v518_v57  ;;  %824 = vmatpush2.msra.mxu0 %v646_v58  ;;  %v608_v57 = vld [vmem:[#allocation8 + $0x5b0] sm:$0xff]  ;;  %v477_v58 = vld [vmem:[#allocation8 + $0x198] sm:$0xff] }
 0x155   :  { %754 = vmatprep.subr.mxu1 %v515_v59  ;;  %825 = vmatprep.subr.mxu0 %v643_v60  ;;  %v605_v59 = vld [vmem:[#allocation8 + $0x598] sm:$0xff]  ;;  %v476_v60 = vld [vmem:[#allocation8 + $0x190] sm:$0xff] }
 0x156   :  { %755 = vmatpush2.msra.mxu1 %v514_v61  ;;  %826 = vmatpush2.msra.mxu0 %v642_v62  ;;  %v604_v61 = vld [vmem:[#allocation8 + $0x590] sm:$0xff]  ;;  %v473_v62 = vld [vmem:[#allocation8 + $0x178] sm:$0xff] }
 0x157   :  { %756 = vmatprep.subr.mxu1 %v511_v63  ;;  %827 = vmatprep.subr.mxu0 %v639_v0  ;;  %v601_v63 = vld [vmem:[#allocation8 + $0x578] sm:$0xff]  ;;  %v472_v0 = vld [vmem:[#allocation8 + $0x170] sm:$0xff] }
 0x158   :  { %757 = vmatpush2.msra.mxu1 %v510_v1  ;;  %828 = vmatpush2.msra.mxu0 %v638_v2  ;;  %v600_v1 = vld [vmem:[#allocation8 + $0x570] sm:$0xff]  ;;  %v469_v2 = vld [vmem:[#allocation8 + $0x158] sm:$0xff] }
 0x159   :  { %758 = vmatprep.subr.mxu1 %v507_v3  ;;  %829 = vmatprep.subr.mxu0 %v635_v4  ;;  %v597_v3 = vld [vmem:[#allocation8 + $0x558] sm:$0xff]  ;;  %v468_v4 = vld [vmem:[#allocation8 + $0x150] sm:$0xff] }
 0x15a   :  { %759 = vmatpush2.msra.mxu1 %v506_v5  ;;  %830 = vmatpush2.msra.mxu0 %v634_v6  ;;  %v596_v5 = vld [vmem:[#allocation8 + $0x550] sm:$0xff]  ;;  %v465_v6 = vld [vmem:[#allocation8 + $0x138] sm:$0xff] }
 0x15b   :  { %760 = vmatprep.subr.mxu1 %v503_v7  ;;  %831 = vmatprep.subr.mxu0 %v631_v8  ;;  %v593_v7 = vld [vmem:[#allocation8 + $0x538] sm:$0xff]  ;;  %v464_v8 = vld [vmem:[#allocation8 + $0x130] sm:$0xff] }
 0x15c   :  { %761 = vmatpush2.msra.mxu1 %v502_v9  ;;  %832 = vmatpush2.msra.mxu0 %v630_v10  ;;  %v592_v9 = vld [vmem:[#allocation8 + $0x530] sm:$0xff]  ;;  %v461_v10 = vld [vmem:[#allocation8 + $0x118] sm:$0xff] }
 0x15d   :  { %762 = vmatprep.subr.mxu1 %v499_v11  ;;  %833 = vmatprep.subr.mxu0 %v627_v12  ;;  %v589_v11 = vld [vmem:[#allocation8 + $0x518] sm:$0xff]  ;;  %v460_v12 = vld [vmem:[#allocation8 + $0x110] sm:$0xff] }
 0x15e   :  { %763 = vmatpush2.msra.mxu1 %v498_v13  ;;  %834 = vmatpush2.msra.mxu0 %v626_v14  ;;  %v588_v13 = vld [vmem:[#allocation8 + $0x510] sm:$0xff]  ;;  %v457_v14 = vld [vmem:[#allocation8 + $0xf8] sm:$0xff] }
 0x15f   :  { %764 = vmatprep.subr.mxu1 %v495_v15  ;;  %835 = vmatprep.subr.mxu0 %v623_v16  ;;  %v585_v15 = vld [vmem:[#allocation8 + $0x4f8] sm:$0xff]  ;;  %v456_v16 = vld [vmem:[#allocation8 + $0xf0] sm:$0xff] }
 0x160   :  { %765 = vmatpush2.msra.mxu1 %v494_v17  ;;  %836 = vmatpush2.msra.mxu0 %v622_v18  ;;  %v584_v17 = vld [vmem:[#allocation8 + $0x4f0] sm:$0xff]  ;;  %v453_v18 = vld [vmem:[#allocation8 + $0xd8] sm:$0xff] }
 0x161   :  { %766 = vmatprep.subr.mxu1 %v491_v19  ;;  %837 = vmatprep.subr.mxu0 %v619_v20  ;;  %v581_v19 = vld [vmem:[#allocation8 + $0x4d8] sm:$0xff]  ;;  %v452_v20 = vld [vmem:[#allocation8 + $0xd0] sm:$0xff] }
 0x162   :  { %767 = vmatpush2.msra.mxu1 %v490_v21  ;;  %838 = vmatpush2.msra.mxu0 %v618_v22  ;;  %v580_v21 = vld [vmem:[#allocation8 + $0x4d0] sm:$0xff]  ;;  %v449_v22 = vld [vmem:[#allocation8 + $0xb8] sm:$0xff] }
 0x163   :  { %846 = vmatprep.subr.mxu1 %v489_v23  ;;  %917 = vmatprep.subr.mxu0 %v617_v24  ;;  %v577_v23 = vld [vmem:[#allocation8 + $0x4b8] sm:$0xff]  ;;  %v448_v24 = vld [vmem:[#allocation8 + $0xb0] sm:$0xff] }
 0x1e3   :  { %v346_v36 = vpop.f32.mrf.mxu1  ;;  %v417_v37 = vpop.f32.mrf.mxu0 }
 0x1e4   :  { %v1607_v38 = vadd.f32 %v346_v36, %v263_v32  ;;  %v1609_v39 = vadd.f32 %v417_v37, %v271_v33  ;;  %v573_v32 = vld [vmem:[#allocation8 + $0x498] sm:$0xff]  ;;  %v444_v33 = vld [vmem:[#allocation8 + $0x90] sm:$0xff] }
 0x1e5   :  { %v348_v40 = vpop.f32.mrf.mxu1  ;;  %v419_v41 = vpop.f32.mrf.mxu0  ;;  %v569_v36 = vld [vmem:[#allocation8 + $0x478] sm:$0xff]  ;;  %v440_v37 = vld [vmem:[#allocation8 + $0x70] sm:$0xff] }
 0x1e6   :  { %v349_v42 = vadd.f32 %v348_v40, %v267_v34  ;;  %v420_v43 = vadd.f32 %v419_v41, %v275_v35  ;;  %v422_v46 = vmax.f32 %v1607_v38, 0.0  ;;  %v424_v47 = vmax.f32 %v1609_v39, 0.0  ;;  %v572_v34 = vld [vmem:[#allocation8 + $0x490] sm:$0xff]  ;;  %v441_v35 = vld [vmem:[#allocation8 + $0x78] sm:$0xff] }
 0x1e7   :  { %v568_v40 = vld [vmem:[#allocation8 + $0x470] sm:$0xff]  ;;  %v437_v41 = vld [vmem:[#allocation8 + $0x58] sm:$0xff] }
 0x1e8   :  { %v423_v44 = vmax.f32 %v349_v42, 0.0  ;;  %v425_v45 = vmax.f32 %v420_v43, 0.0  ;;  %v565_v42 = vld [vmem:[#allocation8 + $0x458] sm:$0xff]  ;;  %v436_v43 = vld [vmem:[#allocation8 + $0x50] sm:$0xff] }
 0x1e9   :  { %v1018_v38 = vld [vmem:[#allocation10 + $0xd0] sm:$0xff]  ;;  %v1055_v39 = vld [vmem:[#allocation10 + $0x1f8] sm:$0xff] }
 0x1ea   :  { %768 = vmatprep.mubr.f32.mxu1 %v423_v44  ;;  %839 = vmatprep.mubr.f32.mxu0 %v425_v45 }
 0x1eb   :  { %769 = vmatmul.mubr.f32.vlgmr.msra.gmra.mxu1 %v422_v46  ;;  %840 = vmatmul.mubr.f32.vlgmr.msra.gmra.mxu0 %v424_v47 }
 0x1ec   :  { %847 = vmatpush1.msra.mxu1 %v488_v48  ;;  %918 = vmatpush1.msra.mxu0 %v616_v49  ;;  %v561_v48 = vld [vmem:[#allocation8 + $0x438] sm:$0xff]  ;;  %v432_v49 = vld [vmem:[#allocation8 + $0x30] sm:$0xff] }
 0x1ed   :  { %848 = vmatprep.subr.mxu1 %v485_v50  ;;  %910 = vmatprep.mubr.f32.mxu1 %v423_v44  ;;  %v564_v44 = vld [vmem:[#allocation8 + $0x450] sm:$0xff] }
 0x1ee   :  { %919 = vmatprep.subr.mxu0 %v613_v51  ;;  %981 = vmatprep.mubr.f32.mxu0 %v425_v45  ;;  %v433_v45 = vld [vmem:[#allocation8 + $0x38] sm:$0xff]  ;;  %v560_v50 = vld [vmem:[#allocation8 + $0x430] sm:$0xff] }
 0x1ef   :  { %849 = vmatpush1.msra.mxu1 %v484_v52  ;;  %920 = vmatpush1.msra.mxu0 %v612_v53  ;;  %v429_v51 = vld [vmem:[#allocation8 + $0x18] sm:$0xff]  ;;  %v428_v53 = vld [vmem:[#allocation8 + $0x10] sm:$0xff] }
 0x1f0   :  { %850 = vmatprep.subr.mxu1 %v481_v54  ;;  %921 = vmatprep.subr.mxu0 %v609_v55  ;;  %v557_v52 = vld [vmem:[#allocation8 + $0x418] sm:$0xff]  ;;  %v556_v54 = vld [vmem:[#allocation8 + $0x410] sm:$0xff] }
 0x1f1   :  { %851 = vmatpush1.msra.mxu1 %v480_v56  ;;  %922 = vmatpush1.msra.mxu0 %v608_v57  ;;  %v553_v55 = vld [vmem:[#allocation8 + $0x3f8] sm:$0xff]  ;;  %v552_v57 = vld [vmem:[#allocation8 + $0x3f0] sm:$0xff] }
 0x1f2   :  { %852 = vmatprep.subr.mxu1 %v477_v58  ;;  %923 = vmatprep.subr.mxu0 %v605_v59  ;;  %v681_v56 = vld [vmem:[#allocation8 + $0x7f8] sm:$0xff]  ;;  %v680_v58 = vld [vmem:[#allocation8 + $0x7f0] sm:$0xff] }
 0x1f3   :  { %853 = vmatpush1.msra.mxu1 %v476_v60  ;;  %924 = vmatpush1.msra.mxu0 %v604_v61  ;;  %v549_v59 = vld [vmem:[#allocation8 + $0x3d8] sm:$0xff]  ;;  %v548_v61 = vld [vmem:[#allocation8 + $0x3d0] sm:$0xff] }
 0x1f4   :  { %854 = vmatprep.subr.mxu1 %v473_v62  ;;  %925 = vmatprep.subr.mxu0 %v601_v63  ;;  %v677_v60 = vld [vmem:[#allocation8 + $0x7d8] sm:$0xff]  ;;  %v676_v62 = vld [vmem:[#allocation8 + $0x7d0] sm:$0xff] }
 0x1f5   :  { %855 = vmatpush1.msra.mxu1 %v472_v0  ;;  %926 = vmatpush1.msra.mxu0 %v600_v1  ;;  %v545_v63 = vld [vmem:[#allocation8 + $0x3b8] sm:$0xff]  ;;  %v544_v1 = vld [vmem:[#allocation8 + $0x3b0] sm:$0xff] }
 0x1f6   :  { %856 = vmatprep.subr.mxu1 %v469_v2  ;;  %927 = vmatprep.subr.mxu0 %v597_v3  ;;  %v673_v0 = vld [vmem:[#allocation8 + $0x7b8] sm:$0xff]  ;;  %v672_v2 = vld [vmem:[#allocation8 + $0x7b0] sm:$0xff] }
 0x1f7   :  { %857 = vmatpush1.msra.mxu1 %v468_v4  ;;  %928 = vmatpush1.msra.mxu0 %v596_v5  ;;  %v541_v3 = vld [vmem:[#allocation8 + $0x398] sm:$0xff]  ;;  %v540_v5 = vld [vmem:[#allocation8 + $0x390] sm:$0xff] }
 0x1f8   :  { %858 = vmatprep.subr.mxu1 %v465_v6  ;;  %929 = vmatprep.subr.mxu0 %v593_v7  ;;  %v669_v4 = vld [vmem:[#allocation8 + $0x798] sm:$0xff]  ;;  %v668_v6 = vld [vmem:[#allocation8 + $0x790] sm:$0xff] }
 0x1f9   :  { %859 = vmatpush1.msra.mxu1 %v464_v8  ;;  %930 = vmatpush1.msra.mxu0 %v592_v9  ;;  %v537_v7 = vld [vmem:[#allocation8 + $0x378] sm:$0xff]  ;;  %v536_v9 = vld [vmem:[#allocation8 + $0x370] sm:$0xff] }
 0x1fa   :  { %860 = vmatprep.subr.mxu1 %v461_v10  ;;  %931 = vmatprep.subr.mxu0 %v589_v11  ;;  %v665_v8 = vld [vmem:[#allocation8 + $0x778] sm:$0xff]  ;;  %v664_v10 = vld [vmem:[#allocation8 + $0x770] sm:$0xff] }
 0x1fb   :  { %861 = vmatpush1.msra.mxu1 %v460_v12  ;;  %932 = vmatpush1.msra.mxu0 %v588_v13  ;;  %v533_v11 = vld [vmem:[#allocation8 + $0x358] sm:$0xff]  ;;  %v532_v13 = vld [vmem:[#allocation8 + $0x350] sm:$0xff] }
 0x1fc   :  { %862 = vmatprep.subr.mxu1 %v457_v14  ;;  %933 = vmatprep.subr.mxu0 %v585_v15  ;;  %v661_v12 = vld [vmem:[#allocation8 + $0x758] sm:$0xff]  ;;  %v660_v14 = vld [vmem:[#allocation8 + $0x750] sm:$0xff] }
 0x1fd   :  { %863 = vmatpush1.msra.mxu1 %v456_v16  ;;  %934 = vmatpush1.msra.mxu0 %v584_v17  ;;  %v529_v15 = vld [vmem:[#allocation8 + $0x338] sm:$0xff]  ;;  %v528_v17 = vld [vmem:[#allocation8 + $0x330] sm:$0xff] }
 0x1fe   :  { %864 = vmatprep.subr.mxu1 %v453_v18  ;;  %935 = vmatprep.subr.mxu0 %v581_v19  ;;  %v657_v16 = vld [vmem:[#allocation8 + $0x738] sm:$0xff]  ;;  %v656_v18 = vld [vmem:[#allocation8 + $0x730] sm:$0xff] }
 0x1ff   :  { %865 = vmatpush1.msra.mxu1 %v452_v20  ;;  %936 = vmatpush1.msra.mxu0 %v580_v21  ;;  %v525_v19 = vld [vmem:[#allocation8 + $0x318] sm:$0xff]  ;;  %v524_v21 = vld [vmem:[#allocation8 + $0x310] sm:$0xff] }
 0x200   :  { %866 = vmatprep.subr.mxu1 %v449_v22  ;;  %937 = vmatprep.subr.mxu0 %v577_v23  ;;  %v653_v20 = vld [vmem:[#allocation8 + $0x718] sm:$0xff]  ;;  %v652_v22 = vld [vmem:[#allocation8 + $0x710] sm:$0xff] }
 0x201   :  { %867 = vmatpush1.msra.mxu1 %v448_v24  ;;  %938 = vmatpush1.msra.mxu0 %v576_v25  ;;  %v521_v23 = vld [vmem:[#allocation8 + $0x2f8] sm:$0xff]  ;;  %v520_v25 = vld [vmem:[#allocation8 + $0x2f0] sm:$0xff] }
 0x202   :  { %868 = vmatprep.subr.mxu1 %v445_v29  ;;  %939 = vmatprep.subr.mxu0 %v573_v32  ;;  %v649_v24 = vld [vmem:[#allocation8 + $0x6f8] sm:$0xff]  ;;  %v648_v29 = vld [vmem:[#allocation8 + $0x6f0] sm:$0xff] }
 0x203   :  { %869 = vmatpush1.msra.mxu1 %v444_v33  ;;  %940 = vmatpush1.msra.mxu0 %v572_v34  ;;  %v517_v32 = vld [vmem:[#allocation8 + $0x2d8] sm:$0xff]  ;;  %v516_v34 = vld [vmem:[#allocation8 + $0x2d0] sm:$0xff] }
 0x204   :  { %870 = vmatprep.subr.mxu1 %v441_v35  ;;  %941 = vmatprep.subr.mxu0 %v569_v36  ;;  %v645_v33 = vld [vmem:[#allocation8 + $0x6d8] sm:$0xff]  ;;  %v644_v35 = vld [vmem:[#allocation8 + $0x6d0] sm:$0xff] }
 0x205   :  { %871 = vmatpush1.msra.mxu1 %v440_v37  ;;  %942 = vmatpush1.msra.mxu0 %v568_v40  ;;  %v513_v36 = vld [vmem:[#allocation8 + $0x2b8] sm:$0xff]  ;;  %v512_v40 = vld [vmem:[#allocation8 + $0x2b0] sm:$0xff] }
 0x206   :  { %872 = vmatprep.subr.mxu1 %v437_v41  ;;  %943 = vmatprep.subr.mxu0 %v565_v42  ;;  %v641_v37 = vld [vmem:[#allocation8 + $0x6b8] sm:$0xff]  ;;  %v640_v41 = vld [vmem:[#allocation8 + $0x6b0] sm:$0xff] }
 0x207   :  { %873 = vmatpush1.msra.mxu1 %v436_v43  ;;  %944 = vmatpush1.msra.mxu0 %v564_v44  ;;  %v509_v42 = vld [vmem:[#allocation8 + $0x298] sm:$0xff]  ;;  %v508_v44 = vld [vmem:[#allocation8 + $0x290] sm:$0xff] }
 0x208   :  { %874 = vmatprep.subr.mxu1 %v433_v45  ;;  %945 = vmatprep.subr.mxu0 %v561_v48  ;;  %v637_v43 = vld [vmem:[#allocation8 + $0x698] sm:$0xff]  ;;  %v636_v45 = vld [vmem:[#allocation8 + $0x690] sm:$0xff] }
 0x209   :  { %875 = vmatpush1.msra.mxu1 %v432_v49  ;;  %946 = vmatpush1.msra.mxu0 %v560_v50  ;;  %v505_v48 = vld [vmem:[#allocation8 + $0x278] sm:$0xff]  ;;  %v504_v50 = vld [vmem:[#allocation8 + $0x270] sm:$0xff] }
 0x20a   :  { %876 = vmatprep.subr.mxu1 %v429_v51  ;;  %947 = vmatprep.subr.mxu0 %v557_v52  ;;  %v633_v49 = vld [vmem:[#allocation8 + $0x678] sm:$0xff]  ;;  %v632_v51 = vld [vmem:[#allocation8 + $0x670] sm:$0xff] }
 0x20b   :  { %877 = vmatpush1.msra.mxu1 %v428_v53  ;;  %948 = vmatpush1.msra.mxu0 %v556_v54  ;;  %v501_v52 = vld [vmem:[#allocation8 + $0x258] sm:$0xff]  ;;  %v500_v54 = vld [vmem:[#allocation8 + $0x250] sm:$0xff] }
 0x20c   :  { %878 = vmatprep.subr.mxu1 %v553_v55  ;;  %949 = vmatprep.subr.mxu0 %v681_v56  ;;  %v629_v53 = vld [vmem:[#allocation8 + $0x658] sm:$0xff]  ;;  %v628_v55 = vld [vmem:[#allocation8 + $0x650] sm:$0xff] }
 0x20d   :  { %879 = vmatpush2.msra.mxu1 %v552_v57  ;;  %950 = vmatpush2.msra.mxu0 %v680_v58  ;;  %v497_v56 = vld [vmem:[#allocation8 + $0x238] sm:$0xff]  ;;  %v496_v58 = vld [vmem:[#allocation8 + $0x230] sm:$0xff] }
 0x20e   :  { %880 = vmatprep.subr.mxu1 %v549_v59  ;;  %951 = vmatprep.subr.mxu0 %v677_v60  ;;  %v625_v57 = vld [vmem:[#allocation8 + $0x638] sm:$0xff]  ;;  %v624_v59 = vld [vmem:[#allocation8 + $0x630] sm:$0xff] }
 0x20f   :  { %881 = vmatpush2.msra.mxu1 %v548_v61  ;;  %952 = vmatpush2.msra.mxu0 %v676_v62  ;;  %v493_v60 = vld [vmem:[#allocation8 + $0x218] sm:$0xff]  ;;  %v492_v62 = vld [vmem:[#allocation8 + $0x210] sm:$0xff] }
 0x210   :  { %882 = vmatprep.subr.mxu1 %v545_v63  ;;  %953 = vmatprep.subr.mxu0 %v673_v0  ;;  %v621_v61 = vld [vmem:[#allocation8 + $0x618] sm:$0xff]  ;;  %v620_v63 = vld [vmem:[#allocation8 + $0x610] sm:$0xff] }
 0x211   :  { %883 = vmatpush2.msra.mxu1 %v544_v1  ;;  %954 = vmatpush2.msra.mxu0 %v672_v2  ;;  %v1023_v0 = vld [vmem:[#allocation10 + $0xf8] sm:$0xff]  ;;  %v1022_v2 = vld [vmem:[#allocation10 + $0xf0] sm:$0xff] }
 0x212   :  { %884 = vmatprep.subr.mxu1 %v541_v3  ;;  %955 = vmatprep.subr.mxu0 %v669_v4  ;;  %v1007_v1 = vld [vmem:[#allocation10 + $0x78] sm:$0xff]  ;;  %v1006_v3 = vld [vmem:[#allocation10 + $0x70] sm:$0xff]  ;;  %v1021_v4 = vld [vmem:[#allocation10 + $0xe8] sm:$0xff] }
 0x213   :  { %885 = vmatpush2.msra.mxu1 %v540_v5  ;;  %956 = vmatpush2.msra.mxu0 %v668_v6  ;;  %v1005_v5 = vld [vmem:[#allocation10 + $0x68] sm:$0xff]  ;;  %v1020_v6 = vld [vmem:[#allocation10 + $0xe0] sm:$0xff] }
 0x214   :  { %886 = vmatprep.subr.mxu1 %v537_v7  ;;  %957 = vmatprep.subr.mxu0 %v665_v8  ;;  %v1004_v7 = vld [vmem:[#allocation10 + $0x60] sm:$0xff]  ;;  %v1019_v8 = vld [vmem:[#allocation10 + $0xd8] sm:$0xff] }
 0x215   :  { %887 = vmatpush2.msra.mxu1 %v536_v9  ;;  %958 = vmatpush2.msra.mxu0 %v664_v10  ;;  %v1003_v9 = vld [vmem:[#allocation10 + $0x58] sm:$0xff]  ;;  %v1054_v10 = vld [vmem:[#allocation10 + $0x1f0] sm:$0xff] }
 0x216   :  { %888 = vmatprep.subr.mxu1 %v533_v11  ;;  %959 = vmatprep.subr.mxu0 %v661_v12  ;;  %v1017_v11 = vld [vmem:[#allocation10 + $0xc8] sm:$0xff]  ;;  %v1038_v12 = vld [vmem:[#allocation10 + $0x170] sm:$0xff] }
 0x217   :  { %889 = vmatpush2.msra.mxu1 %v532_v13  ;;  %960 = vmatpush2.msra.mxu0 %v660_v14  ;;  %v1001_v13 = vld [vmem:[#allocation10 + $0x48] sm:$0xff] }
 0x218   :  { %890 = vmatprep.subr.mxu1 %v529_v15  ;;  %961 = vmatprep.subr.mxu0 %v657_v16  ;;  %v1053_v14 = vld [vmem:[#allocation10 + $0x1e8] sm:$0xff]  ;;  %v1016_v15 = vld [vmem:[#allocation10 + $0xc0] sm:$0xff] }
 0x219   :  { %891 = vmatpush2.msra.mxu1 %v528_v17  ;;  %962 = vmatpush2.msra.mxu0 %v656_v18  ;;  %v1037_v16 = vld [vmem:[#allocation10 + $0x168] sm:$0xff]  ;;  %v1000_v17 = vld [vmem:[#allocation10 + $0x40] sm:$0xff] }
 0x21a   :  { %892 = vmatprep.subr.mxu1 %v525_v19  ;;  %963 = vmatprep.subr.mxu0 %v653_v20  ;;  %v1052_v18 = vld [vmem:[#allocation10 + $0x1e0] sm:$0xff]  ;;  %v1015_v19 = vld [vmem:[#allocation10 + $0xb8] sm:$0xff] }
 0x21b   :  { %893 = vmatpush2.msra.mxu1 %v524_v21  ;;  %964 = vmatpush2.msra.mxu0 %v652_v22  ;;  %v1036_v20 = vld [vmem:[#allocation10 + $0x160] sm:$0xff]  ;;  %v999_v21 = vld [vmem:[#allocation10 + $0x38] sm:$0xff] }
 0x21c   :  { %894 = vmatprep.subr.mxu1 %v521_v23  ;;  %965 = vmatprep.subr.mxu0 %v649_v24  ;;  %v1051_v22 = vld [vmem:[#allocation10 + $0x1d8] sm:$0xff]  ;;  %v1014_v23 = vld [vmem:[#allocation10 + $0xb0] sm:$0xff] }
 0x21d   :  { %895 = vmatpush2.msra.mxu1 %v520_v25  ;;  %966 = vmatpush2.msra.mxu0 %v648_v29  ;;  %v1035_v24 = vld [vmem:[#allocation10 + $0x158] sm:$0xff]  ;;  %v998_v25 = vld [vmem:[#allocation10 + $0x30] sm:$0xff] }
 0x21e   :  { %896 = vmatprep.subr.mxu1 %v517_v32  ;;  %967 = vmatprep.subr.mxu0 %v645_v33  ;;  %v1050_v29 = vld [vmem:[#allocation10 + $0x1d0] sm:$0xff]  ;;  %v1013_v32 = vld [vmem:[#allocation10 + $0xa8] sm:$0xff] }
 0x21f   :  { %897 = vmatpush2.msra.mxu1 %v516_v34  ;;  %968 = vmatpush2.msra.mxu0 %v644_v35  ;;  %v1034_v33 = vld [vmem:[#allocation10 + $0x150] sm:$0xff]  ;;  %v997_v34 = vld [vmem:[#allocation10 + $0x28] sm:$0xff] }
 0x220   :  { %898 = vmatprep.subr.mxu1 %v513_v36  ;;  %969 = vmatprep.subr.mxu0 %v641_v37  ;;  %v1049_v35 = vld [vmem:[#allocation10 + $0x1c8] sm:$0xff]  ;;  %v1012_v36 = vld [vmem:[#allocation10 + $0xa0] sm:$0xff] }
 0x221   :  { %899 = vmatpush2.msra.mxu1 %v512_v40  ;;  %970 = vmatpush2.msra.mxu0 %v640_v41  ;;  %v1033_v37 = vld [vmem:[#allocation10 + $0x148] sm:$0xff]  ;;  %v996_v40 = vld [vmem:[#allocation10 + $0x20] sm:$0xff] }
 0x222   :  { %900 = vmatprep.subr.mxu1 %v509_v42  ;;  %971 = vmatprep.subr.mxu0 %v637_v43  ;;  %v1048_v41 = vld [vmem:[#allocation10 + $0x1c0] sm:$0xff]  ;;  %v1011_v42 = vld [vmem:[#allocation10 + $0x98] sm:$0xff] }
 0x223   :  { %901 = vmatpush2.msra.mxu1 %v508_v44  ;;  %972 = vmatpush2.msra.mxu0 %v636_v45  ;;  %v1032_v43 = vld [vmem:[#allocation10 + $0x140] sm:$0xff]  ;;  %v995_v44 = vld [vmem:[#allocation10 + $0x18] sm:$0xff] }
 0x224   :  { %902 = vmatprep.subr.mxu1 %v505_v48  ;;  %973 = vmatprep.subr.mxu0 %v633_v49  ;;  %v1047_v45 = vld [vmem:[#allocation10 + $0x1b8] sm:$0xff]  ;;  %v1010_v48 = vld [vmem:[#allocation10 + $0x90] sm:$0xff] }
 0x225   :  { %903 = vmatpush2.msra.mxu1 %v504_v50  ;;  %974 = vmatpush2.msra.mxu0 %v632_v51  ;;  %v1031_v49 = vld [vmem:[#allocation10 + $0x138] sm:$0xff]  ;;  %v994_v50 = vld [vmem:[#allocation10 + $0x10] sm:$0xff] }
 0x226   :  { %904 = vmatprep.subr.mxu1 %v501_v52  ;;  %975 = vmatprep.subr.mxu0 %v629_v53  ;;  %v1046_v51 = vld [vmem:[#allocation10 + $0x1b0] sm:$0xff]  ;;  %v1009_v52 = vld [vmem:[#allocation10 + $0x88] sm:$0xff] }
 0x227   :  { %905 = vmatpush2.msra.mxu1 %v500_v54  ;;  %976 = vmatpush2.msra.mxu0 %v628_v55  ;;  %v1030_v53 = vld [vmem:[#allocation10 + $0x130] sm:$0xff]  ;;  %v993_v54 = vld [vmem:[#allocation10 + $0x8] sm:$0xff] }
 0x228   :  { %906 = vmatprep.subr.mxu1 %v497_v56  ;;  %977 = vmatprep.subr.mxu0 %v625_v57  ;;  %v1045_v55 = vld [vmem:[#allocation10 + $0x1a8] sm:$0xff]  ;;  %v1008_v56 = vld [vmem:[#allocation10 + $0x80] sm:$0xff] }
 0x229   :  { %907 = vmatpush2.msra.mxu1 %v496_v58  ;;  %978 = vmatpush2.msra.mxu0 %v624_v59  ;;  %v1029_v57 = vld [vmem:[#allocation10 + $0x128] sm:$0xff]  ;;  %v992_v58 = vld [vmem:[#allocation10] sm:$0xff] }
 0x22a   :  { %908 = vmatprep.subr.mxu1 %v493_v60  ;;  %979 = vmatprep.subr.mxu0 %v621_v61  ;;  %v1044_v59 = vld [vmem:[#allocation10 + $0x1a0] sm:$0xff]  ;;  %v1043_v61 = vld [vmem:[#allocation10 + $0x198] sm:$0xff] }
 0x22b   :  { %909 = vmatpush2.msra.mxu1 %v492_v62  ;;  %980 = vmatpush2.msra.mxu0 %v620_v63  ;;  %v1028_v60 = vld [vmem:[#allocation10 + $0x120] sm:$0xff]  ;;  %v1027_v62 = vld [vmem:[#allocation10 + $0x118] sm:$0xff]  ;;  %v1042_v63 = vld [vmem:[#allocation10 + $0x190] sm:$0xff] }
 0x22c   :  { %911 = vmatmul.mubr.f32.vlgmr.msra.gmra.mxu1 %v422_v46  ;;  %982 = vmatmul.mubr.f32.vlgmr.msra.gmra.mxu0 %v424_v47  ;;  %v1002_v46 = vld [vmem:[#allocation10 + $0x50] sm:$0xff]  ;;  %v1039_v47 = vld [vmem:[#allocation10 + $0x178] sm:$0xff] }
 0x22d   :  { %1240 = vmatprep.subr.mxu1 %v1023_v0  ;;  %1275 = vmatprep.subr.mxu0 %v1055_v39  ;;  %v1026_v0 = vld [vmem:[#allocation10 + $0x110] sm:$0xff] }
 0x22e   :  { %1241 = vmatpush3.msra.mxu1 %v1007_v1  ;;  %1276 = vmatpush3.msra.mxu0 %v1039_v47  ;;  %v1041_v1 = vld [vmem:[#allocation10 + $0x188] sm:$0xff] }
 0x22f   :  { %1242 = vmatprep.subr.mxu1 %v1022_v2  ;;  %1277 = vmatprep.subr.mxu0 %v1054_v10  ;;  %v1025_v2 = vld [vmem:[#allocation10 + $0x108] sm:$0xff] }
 0x230   :  { %1243 = vmatpush3.msra.mxu1 %v1006_v3  ;;  %1278 = vmatpush3.msra.mxu0 %v1038_v12  ;;  %v1040_v3 = vld [vmem:[#allocation10 + $0x180] sm:$0xff] }
 0x231   :  { %1244 = vmatprep.subr.mxu1 %v1021_v4  ;;  %1279 = vmatprep.subr.mxu0 %v1053_v14  ;;  %v1024_v4 = vld [vmem:[#allocation10 + $0x100] sm:$0xff] }
 0x232   :  { %1245 = vmatpush3.msra.mxu1 %v1005_v5  ;;  %1280 = vmatpush3.msra.mxu0 %v1037_v16  ;;  %v682_v5 = vld [vmem:[%s1644_s6] sm:$0xf] }
 0x233   :  { %1246 = vmatprep.subr.mxu1 %v1020_v6  ;;  %1281 = vmatprep.subr.mxu0 %v1052_v18  ;;  %v687_v6 = vrot.slane %v682_v5, %v262_v27  ;;  %v695_v14 = vrot.slane %v682_v5, %v270_v28  ;;  %v699_v27 = vrot.slane %v682_v5, %v274_v31 }
 0x234   :  { %1247 = vmatpush3.msra.mxu1 %v1004_v7  ;;  %1282 = vmatpush3.msra.mxu0 %v1036_v20  ;;  %v691_v7 = vrot.slane %v682_v5, %v266_v30 }
 0x235   :  { %1248 = vmatprep.subr.mxu1 %v1019_v8  ;;  %1283 = vmatprep.subr.mxu0 %v1051_v22 }
 0x236   :  { %1249 = vmatpush3.msra.mxu1 %v1003_v9  ;;  %1284 = vmatpush3.msra.mxu0 %v1035_v24 }
 0x237   :  { %1250 = vmatprep.subr.mxu1 %v1018_v38  ;;  %1285 = vmatprep.subr.mxu0 %v1050_v29 }
 0x238   :  { %1251 = vmatpush3.msra.mxu1 %v1002_v46  ;;  %1286 = vmatpush3.msra.mxu0 %v1034_v33 }
 0x239   :  { %1252 = vmatprep.subr.mxu1 %v1017_v11  ;;  %1287 = vmatprep.subr.mxu0 %v1049_v35 }
 0x23a   :  { %1253 = vmatpush3.msra.mxu1 %v1001_v13  ;;  %1288 = vmatpush3.msra.mxu0 %v1033_v37 }
 0x23b   :  { %1254 = vmatprep.subr.mxu1 %v1016_v15  ;;  %1289 = vmatprep.subr.mxu0 %v1048_v41 }
 0x23c   :  { %1255 = vmatpush3.msra.mxu1 %v1000_v17  ;;  %1290 = vmatpush3.msra.mxu0 %v1032_v43 }
 0x23d   :  { %1256 = vmatprep.subr.mxu1 %v1015_v19  ;;  %1291 = vmatprep.subr.mxu0 %v1047_v45 }
 0x23e   :  { %1257 = vmatpush3.msra.mxu1 %v999_v21  ;;  %1292 = vmatpush3.msra.mxu0 %v1031_v49 }
 0x23f   :  { %1258 = vmatprep.subr.mxu1 %v1014_v23  ;;  %1293 = vmatprep.subr.mxu0 %v1046_v51 }
 0x240   :  { %1259 = vmatpush3.msra.mxu1 %v998_v25  ;;  %1294 = vmatpush3.msra.mxu0 %v1030_v53 }
 0x241   :  { %1260 = vmatprep.subr.mxu1 %v1013_v32  ;;  %1295 = vmatprep.subr.mxu0 %v1045_v55 }
 0x242   :  { %1261 = vmatpush3.msra.mxu1 %v997_v34  ;;  %1296 = vmatpush3.msra.mxu0 %v1029_v57 }
 0x243   :  { %1262 = vmatprep.subr.mxu1 %v1012_v36  ;;  %1297 = vmatprep.subr.mxu0 %v1044_v59 }
 0x244   :  { %1263 = vmatpush3.msra.mxu1 %v996_v40  ;;  %1298 = vmatpush3.msra.mxu0 %v1028_v60 }
 0x245   :  { %1264 = vmatprep.subr.mxu1 %v1011_v42  ;;  %1299 = vmatprep.subr.mxu0 %v1043_v61 }
 0x246   :  { %1265 = vmatpush3.msra.mxu1 %v995_v44  ;;  %1300 = vmatpush3.msra.mxu0 %v1027_v62 }
 0x247   :  { %1266 = vmatprep.subr.mxu1 %v1010_v48  ;;  %1301 = vmatprep.subr.mxu0 %v1042_v63 }
 0x248   :  { %1267 = vmatpush3.msra.mxu1 %v994_v50  ;;  %1302 = vmatpush3.msra.mxu0 %v1026_v0 }
 0x249   :  { %1268 = vmatprep.subr.mxu1 %v1009_v52  ;;  %1303 = vmatprep.subr.mxu0 %v1041_v1 }
 0x24a   :  { %1269 = vmatpush3.msra.mxu1 %v993_v54  ;;  %1304 = vmatpush3.msra.mxu0 %v1025_v2 }
 0x24b   :  { %1270 = vmatprep.subr.mxu1 %v1008_v56  ;;  %1305 = vmatprep.subr.mxu0 %v1040_v3 }
 0x24c   :  { %1271 = vmatpush3.msra.mxu1 %v992_v58  ;;  %1306 = vmatpush3.msra.mxu0 %v1024_v4 }
 0x2ab   :  { %v770_v8 = vpop.f32.mrf.mxu1  ;;  %v841_v9 = vpop.f32.mrf.mxu0 }
 0x2ac   :  { %v771_v38 = vadd.f32 %v770_v8, %v687_v6 }
 0x2ad   :  { %v772_v46 = vpop.f32.mrf.mxu1  ;;  %v843_v10 = vpop.f32.mrf.mxu0 }
 0x2ae   :  { %v773_v39 = vadd.f32 %v772_v46, %v691_v7  ;;  %v842_v47 = vadd.f32 %v841_v9, %v771_v38 }
 0x2b0   :  { %v844_v11 = vadd.f32 %v843_v10, %v773_v39  ;;  %v988_v13 = vmax.f32 %v842_v47, 0.0 }
 0x2b2   :  { %v989_v12 = vmax.f32 %v844_v11, 0.0 }
 0x2b4   :  { %1127 = vmatprep.mubr.f32.mxu1 %v989_v12 }
 0x2b5   :  { %1128 = vmatmul.mubr.f32.vlgmr.msra.gmra.mxu1 %v988_v13 }
 0x2ec   :  { %v912_v15 = vpop.f32.mrf.mxu1  ;;  %v983_v30 = vpop.f32.mrf.mxu0 }
 0x2ed   :  { %v913_v16 = vadd.f32 %v912_v15, %v695_v14 }
 0x2ee   :  { %v914_v17 = vpop.f32.mrf.mxu1  ;;  %v985_v20 = vpop.f32.mrf.mxu0 }
 0x2ef   :  { %v915_v18 = vadd.f32 %v914_v17, %v699_v27  ;;  %v984_v19 = vadd.f32 %v983_v30, %v913_v16 }
 0x2f1   :  { %v986_v21 = vadd.f32 %v985_v20, %v915_v18  ;;  %v990_v23 = vmax.f32 %v984_v19, 0.0 }
 0x2f3   :  { %v991_v22 = vmax.f32 %v986_v21, 0.0 }
 0x2f5   :  { %1197 = vmatprep.mubr.f32.mxu0 %v991_v22 }
 0x2f6   :  { %1198 = vmatmul.mubr.f32.vlgmr.msra.gmra.mxu0 %v990_v23 }
 0x375   :  { %v1272_v24 = vpop.f32.mrf.mxu1 }
 0x377   :  { %v1273_v25 = vpop.f32.mrf.mxu1 }
 0x378   :  { %v1274_v29 = vadd.f32 %v1273_v25, %v1272_v24 }
 0x37a   :  { %v1130_v32 = vadd.f32 %v1274_v29, %v1222_v26 }
 0x3b6   :  { %v1307_v28 = vpop.f32.mrf.mxu0 }
 0x3b8   :  { %v1308_v31 = vpop.f32.mrf.mxu0 }
 0x3b9   :  { %v1309_v33 = vadd.f32 %v1308_v31, %v1307_v28 }
 0x3bb   :  { %v1200_v34 = vadd.f32 %v1309_v33, %v1130_v32 }
 0x3bd   :  { %1203 = vst [vmem:[#allocation11] sm:$0xff] %v1200_v34 }
 0x3be   :  { %1468 = shalt.err (!%p1465_p1)
}
 0x3bf   :  { %1213 = dma.vmem_to_hbm [thread:$0]  %s1211_s18, 128, %s1647_s9, [#allocation4]  }
 0x3c0   :  { %1483 = dma.done.wait [#allocation4], 128  }
 0x3c1   :  { %1484 = vsyncadd [#allocation4], 4294967168 }
 0x3c2   :  { %1217 = vsyncpa [#allocation3], 1 }
 0x3c3   :  { %1218 = vsyncpa [#allocation6], 1 }
 0x3c4   :  { %1219 = vsyncpa [#allocation9], 1 }
 0x3c5   :  { %1220 = vsyncpa [#allocation4], 1 }

</bundles_post_ra>
